<compile_context>
chip_gen: v5e
topology: v5e:2x2
jax: 0.10.0
libtpu: 0.0.40
codegen_flags: <defaults>
</compile_context>

<pallas_src>
import jax
import jax.numpy as jnp
from jax import lax
from jax.experimental import pallas as pl
from jax.experimental.pallas import tpu as pltpu

DYNAMIC_SIZE = 5   # len(config['input_dynamic_features'])
STATIC_SIZE = 3    # len(config['input_static_features'])
HIDDEN_SIZE = 32   # config['hidden_size']
OUTPUT_SIZE = 2    # len(config['target_features'])
STEP_BLOCK = 8     # sublane blocking of the time loop


def ea_lstm_kernel(x_ref, wbig_ref, bbig_ref, whf_ref, wout_ref, bout_ref,
                   h0_ref, c0_ref, out_ref, pre_scr, h_scr):
    """EA-LSTM: fused batched pre-projection, 8-step-blocked serial recurrence,
    deferred regression head."""
    T = out_ref.shape[0]            # padded length, multiple of STEP_BLOCK
    H = HIDDEN_SIZE
    G = 3 * H                       # lanes [0:G] = f|o|g, lanes [G:4H] = i

    # ---- Hoisted, T-batched fused projection (off the serial path) -------------
    # (T, F) @ (F, 4H): block-structured weight so dynamic cols feed f|o|g and
    # static cols feed i; then sigmoid only the i lanes.
    pre = jnp.dot(x_ref[...], wbig_ref[...],
                  preferred_element_type=jnp.float32) + bbig_ref[...]
    lane = lax.broadcasted_iota(jnp.int32, pre.shape, dimension=1)
    pre_scr[...] = jnp.where(lane >= G, jax.nn.sigmoid(pre), pre)

    whf = whf_ref[...]              # (H, 3H) = [wfh | woh | wgh]
    nblk = T // STEP_BLOCK

    # ---- Serial recurrence, blocked by 8 sublanes -------------------------------
    def block_body(tb, carry):
        h, c = carry                                        # each (1, H)
        base = pl.multiple_of(tb * STEP_BLOCK, STEP_BLOCK)
        blk = pre_scr[pl.ds(base, STEP_BLOCK), :]           # ONE aligned (8,128) load
        hs = []
        for j in range(STEP_BLOCK):                         # static sublane offsets
            row = blk[j:j + 1, :]                           # (1, 128)
            z = row[:, :G] + jnp.dot(h, whf,
                                     preferred_element_type=jnp.float32)  # (1,3H)
            fo = jax.nn.sigmoid(z[:, :2 * H])               # fused f|o sigmoid
            g_t = jnp.tanh(z[:, 2 * H:])                    # (1, H)
            i_t = row[:, G:]                                # precomputed sigmoid(i)
            c = fo[:, :H] * c + i_t * g_t
            h = fo[:, H:] * jnp.tanh(c)
            hs.append(h)
        # ONE aligned (8, H) store of the h history (deferred output head).
        h_scr[pl.ds(base, STEP_BLOCK), :] = jnp.concatenate(hs, axis=0)
        return (h, c)

    unroll = True if nblk <= 8 else False
    lax.fori_loop(0, nblk, block_body, (h0_ref[...], c0_ref[...]), unroll=unroll)

    # ---- Deferred regression head: one batched matmul + one bulk store ----------
    # TODO(synk): `Linears` config not provided; implemented as a single
    # Linear(hidden_size, output_size) with no final activation.
    out_ref[...] = (
        jnp.dot(h_scr[...], wout_ref[...], preferred_element_type=jnp.float32)
        + bout_ref[...])


def make_params(key):
    """Deterministic parameter init (shapes match the torch module)."""
    ks = jax.random.split(key, 16)

    def lin(k, fan_in, fan_out):
        # torch.nn.Linear default init: U(-1/sqrt(fan_in), 1/sqrt(fan_in))
        bound = 1.0 / jnp.sqrt(jnp.float32(fan_in))
        kw, kb = jax.random.split(k)
        w = jax.random.uniform(kw, (fan_in, fan_out), jnp.float32, -bound, bound)
        b = jax.random.uniform(kb, (1, fan_out), jnp.float32, -bound, bound)
        return w, b

    wi, bi = lin(ks[0], STATIC_SIZE, HIDDEN_SIZE)

    wfd, bfd = lin(ks[1], DYNAMIC_SIZE, HIDDEN_SIZE)
    wfh, bfh = lin(ks[2], HIDDEN_SIZE, HIDDEN_SIZE)
    wgd, bgd = lin(ks[3], DYNAMIC_SIZE, HIDDEN_SIZE)
    wgh, bgh = lin(ks[4], HIDDEN_SIZE, HIDDEN_SIZE)
    wod, bod = lin(ks[5], DYNAMIC_SIZE, HIDDEN_SIZE)
    woh, boh = lin(ks[6], HIDDEN_SIZE, HIDDEN_SIZE)

    wout, bout = lin(ks[7], HIDDEN_SIZE, OUTPUT_SIZE)

    # torch.randn initial states (shape (1, hidden_size) after unsqueeze(0))
    h0 = jax.random.normal(ks[8], (1, HIDDEN_SIZE), jnp.float32)
    c0 = jax.random.normal(ks[9], (1, HIDDEN_SIZE), jnp.float32)

    return dict(
        wi=wi, bi=bi,
        wfd=wfd, wfh=wfh, bf=bfd + bfh,   # MultiLinear adds both linears' biases
        wgd=wgd, wgh=wgh, bg=bgd + bgh,
        wod=wod, woh=woh, bo=bod + boh,
        wout=wout, bout=bout,
        h0=h0, c0=c0,
    )


def fuse_params(p):
    """Build fused weights.

    w_big (F, 4H), block structured, lane order [f | o | g | i]:
        rows [:D]  -> columns [0:3H]  = [wfd | wod | wgd]   (dynamic -> f,o,g)
        rows [D:]  -> columns [3H:4H] = wi                  (static  -> i)
    b_big (1, 4H) = [bf | bo | bg | bi]
    whf   (H, 3H) = [wfh | woh | wgh]
    """
    D, H = DYNAMIC_SIZE, HIDDEN_SIZE
    F = DYNAMIC_SIZE + STATIC_SIZE
    w_big = jnp.zeros((F, 4 * H), jnp.float32)
    w_big = w_big.at[:D, :3 * H].set(
        jnp.concatenate([p['wfd'], p['wod'], p['wgd']], axis=1))
    w_big = w_big.at[D:, 3 * H:].set(p['wi'])
    b_big = jnp.concatenate([p['bf'], p['bo'], p['bg'], p['bi']], axis=1)
    whf = jnp.concatenate([p['wfh'], p['woh'], p['wgh']], axis=1)
    return w_big, b_big, whf


def run_ea_lstm_kernel(x_seq, p):
    """x_seq: (T, dynamic_size + static_size) float32 -> (T, output_size)."""
    T = x_seq.shape[0]
    T_pad = ((T + STEP_BLOCK - 1) // STEP_BLOCK) * STEP_BLOCK
    if T_pad != T:
        # Zero-pad the tail; padded steps run after all real steps so they cannot
        # affect real outputs, and their outputs are sliced away below.
        x_seq = jnp.pad(x_seq, ((0, T_pad - T), (0, 0)))

    wbig, bbig, whf = fuse_params(p)
    args = (x_seq, wbig, bbig, whf, p['wout'], p['bout'], p['h0'], p['c0'])

    # Explicit scoped-VMEM limit sized from T (defaults: 16 MiB v5e, 32 MiB v6e/v7x).
    row_bytes = 4 * (4 * HIDDEN_SIZE)          # one lane-padded f32 row = 512 B
    vmem_bytes = int(min(64 * 1024 * 1024,
                         max(16 * 1024 * 1024, 6 * row_bytes * T_pad + (2 << 20))))

    F = DYNAMIC_SIZE + STATIC_SIZE
    flops = int(T_pad * (2 * F * 4 * HIDDEN_SIZE            # batched pre-projection
                         + 2 * HIDDEN_SIZE * 3 * HIDDEN_SIZE  # recurrent matmul
                         + 2 * HIDDEN_SIZE * OUTPUT_SIZE      # output head
                         + 12 * HIDDEN_SIZE))                 # elementwise state math
    transcendentals = int(T_pad * 5 * HIDDEN_SIZE)
    bytes_accessed = int(x_seq.size * 4 + T_pad * OUTPUT_SIZE * 4 + 64 * 1024)

    vmem_spec = pl.BlockSpec(memory_space=pltpu.MemorySpace.VMEM)
    out = pl.pallas_call(
        ea_lstm_kernel,
        out_shape=jax.ShapeDtypeStruct((T_pad, OUTPUT_SIZE), jnp.float32),
        in_specs=[vmem_spec] * len(args),
        out_specs=vmem_spec,
        scratch_shapes=[
            pltpu.VMEM((T_pad, 4 * HIDDEN_SIZE), jnp.float32),  # fused [f|o|g|sig(i)]
            pltpu.VMEM((T_pad, HIDDEN_SIZE), jnp.float32),      # h_t history for head
        ],
        compiler_params=pltpu.CompilerParams(vmem_limit_bytes=vmem_bytes),
        cost_estimate=pl.CostEstimate(flops=flops,
                                      transcendentals=transcendentals,
                                      bytes_accessed=bytes_accessed),
        # TODO(synk): for very long concatenated sequences add a time-chunked grid
        # ("arbitrary" axis, h/c in scratch) instead of whole-array VMEM residency.
    )(*args)
    return out[:T]


def ea_lstm_forward(x_dict, p):
    """Dict-of-sequences forward; h,c carried across keys like the torch loop,
    so keys are concatenated into one sequence and run through one kernel call."""
    keys = list(x_dict.keys())
    lengths = [x_dict[k].shape[0] for k in keys]
    x_all = jnp.concatenate([x_dict[k] for k in keys], axis=0)
    y_all = run_ea_lstm_kernel(x_all, p)
    out, off = {}, 0
    for k, n in zip(keys, lengths):
        out[k] = y_all[off:off + n]
        off += n
    return out


def reference_forward(x_dict, p):
    """Pure-JAX reference mirroring the PyTorch semantics."""
    h = p['h0']
    c = p['c0']
    out = {}
    for k, x in x_dict.items():
        ys = []
        for i in range(x.shape[0]):
            xd = x[i:i + 1, :DYNAMIC_SIZE]
            xs = x[i:i + 1, DYNAMIC_SIZE:]
            i_t = jax.nn.sigmoid(xs @ p['wi'] + p['bi'])
            f_t = jax.nn.sigmoid(xd @ p['wfd'] + h @ p['wfh'] + p['bf'])
            g_t = jnp.tanh(xd @ p['wgd'] + h @ p['wgh'] + p['bg'])
            o_t = jax.nn.sigmoid(xd @ p['wod'] + h @ p['woh'] + p['bo'])
            c = f_t * c + i_t * g_t
            h = o_t * jnp.tanh(c)
            ys.append(h @ p['wout'] + p['bout'])
        out[k] = jnp.concatenate(ys, axis=0)
    return out


if __name__ == "__main__":
    key = jax.random.PRNGKey(0)
    k_param, k_a, k_b = jax.random.split(key, 3)

    params = make_params(k_param)

    # Small example dict input: two "basins" with different sequence lengths.
    x = {
        "basin_a": jax.random.normal(k_a, (8, DYNAMIC_SIZE + STATIC_SIZE), jnp.float32),
        "basin_b": jax.random.normal(k_b, (6, DYNAMIC_SIZE + STATIC_SIZE), jnp.float32),
    }

    out = ea_lstm_forward(x, params)
    out = jax.tree_util.tree_map(jax.block_until_ready, out)

    ref = reference_forward(x, params)
    for k in x:
        assert out[k].shape == (x[k].shape[0], OUTPUT_SIZE)
        assert jnp.allclose(out[k], ref[k], atol=1e-5, rtol=1e-5), f"mismatch for {k}"

    print("KERNEL_OK")
</pallas_src>

<mosaic_0001>
module attributes {stable_mosaic.version = 11 : i64} {
  func.func @ea_lstm_kernel(%arg0: memref<16x8xf32, #tpu.memory_space<vmem>>, %arg1: memref<8x128xf32, #tpu.memory_space<vmem>>, %arg2: memref<1x128xf32, #tpu.memory_space<vmem>>, %arg3: memref<32x96xf32, #tpu.memory_space<vmem>>, %arg4: memref<32x2xf32, #tpu.memory_space<vmem>>, %arg5: memref<1x2xf32, #tpu.memory_space<vmem>>, %arg6: memref<1x32xf32, #tpu.memory_space<vmem>>, %arg7: memref<1x32xf32, #tpu.memory_space<vmem>>, %arg8: memref<16x2xf32, #tpu.memory_space<vmem>>, %arg9: memref<16x128xf32, #tpu.memory_space<vmem>>, %arg10: memref<16x32xf32, #tpu.memory_space<vmem>>) attributes {dimension_semantics = [], scalar_prefetch = 0 : i64, scratch_operands = 2 : i64, tpu.core_type = #tpu.core_type<tc>} {
    %c0 = arith.constant 0 : index
    %c0_0 = arith.constant 0 : index
    %0 = vector.load %arg0[%c0, %c0_0] : memref<16x8xf32, #tpu.memory_space<vmem>>, vector<16x8xf32>
    %c0_1 = arith.constant 0 : index
    %c0_2 = arith.constant 0 : index
    %1 = vector.load %arg1[%c0_1, %c0_2] : memref<8x128xf32, #tpu.memory_space<vmem>>, vector<8x128xf32>
    %cst = arith.constant dense<0.000000e+00> : vector<16x128xf32>
    %2 = tpu.matmul %0, %1, %cst {dimension_numbers = #tpu.dot_dimension_numbers<[1], [0], [0], [1], [0, 0, 1, 1], [], []>} : vector<16x8xf32>, vector<8x128xf32>, vector<16x128xf32> -> vector<16x128xf32>
    %c0_3 = arith.constant 0 : index
    %c0_4 = arith.constant 0 : index
    %3 = vector.load %arg2[%c0_3, %c0_4] : memref<1x128xf32, #tpu.memory_space<vmem>>, vector<1x128xf32>
    %4 = vector.broadcast %3 : vector<1x128xf32> to vector<16x128xf32>
    %5 = arith.addf %2, %4 : vector<16x128xf32>
    %6 = tpu.iota {dimensions = array<i32: 1>} : vector<16x128xi32>
    %c96_i32 = arith.constant 96 : i32
    %7 = vector.broadcast %c96_i32 : i32 to vector<16x128xi32>
    %8 = arith.cmpi sge, %6, %7 : vector<16x128xi32>
    %9 = arith.negf %5 : vector<16x128xf32>
    %10 = math.exp %9 : vector<16x128xf32>
    %cst_5 = arith.constant 1.000000e+00 : f32
    %11 = vector.broadcast %cst_5 : f32 to vector<16x128xf32>
    %12 = arith.addf %11, %10 : vector<16x128xf32>
    %13 = arith.divf %11, %12 : vector<16x128xf32>
    %14 = arith.select %8, %13, %5 : vector<16x128xi1>, vector<16x128xf32>
    %c0_6 = arith.constant 0 : index
    %c0_7 = arith.constant 0 : index
    %15 = vector.load %arg9[%c0_6, %c0_7] : memref<16x128xf32, #tpu.memory_space<vmem>>, vector<16x128xf32>
    tpu.vector_store %arg9[%c0_6, %c0_7], %14 {strides = array<i32>} : memref<16x128xf32, #tpu.memory_space<vmem>>, vector<16x128xf32>,
    %c0_8 = arith.constant 0 : index
    %c0_9 = arith.constant 0 : index
    %16 = vector.load %arg3[%c0_8, %c0_9] : memref<32x96xf32, #tpu.memory_space<vmem>>, vector<32x96xf32>
    %c0_10 = arith.constant 0 : index
    %c0_11 = arith.constant 0 : index
    %17 = vector.load %arg6[%c0_10, %c0_11] : memref<1x32xf32, #tpu.memory_space<vmem>>, vector<1x32xf32>
    %c0_12 = arith.constant 0 : index
    %c0_13 = arith.constant 0 : index
    %18 = vector.load %arg7[%c0_12, %c0_13] : memref<1x32xf32, #tpu.memory_space<vmem>>, vector<1x32xf32>
    %c0_i32 = arith.constant 0 : i32
    %c8_i32 = arith.constant 8 : i32
    %19 = arith.muli %c0_i32, %c8_i32 : i32
    %20 = tpu.assume_multiple %19, 8 : i32
    %21 = arith.index_cast %20 : i32 to index
    %c0_14 = arith.constant 0 : index
    %22 = vector.load %arg9[%21, %c0_14] : memref<16x128xf32, #tpu.memory_space<vmem>>, vector<8x128xf32>
    %23 = vector.extract_strided_slice %22 {offsets = [0, 0], sizes = [1, 128], strides = [1, 1]} : vector<8x128xf32> to vector<1x128xf32>
    %24 = vector.extract_strided_slice %23 {offsets = [0, 0], sizes = [1, 96], strides = [1, 1]} : vector<1x128xf32> to vector<1x96xf32>
    %cst_15 = arith.constant dense<0.000000e+00> : vector<1x96xf32>
    %25 = tpu.matmul %17, %16, %cst_15 {dimension_numbers = #tpu.dot_dimension_numbers<[1], [0], [0], [1], [0, 0, 1, 1], [], []>} : vector<1x32xf32>, vector<32x96xf32>, vector<1x96xf32> -> vector<1x96xf32>
    %26 = arith.addf %24, %25 : vector<1x96xf32>
    %27 = vector.extract_strided_slice %26 {offsets = [0, 0], sizes = [1, 64], strides = [1, 1]} : vector<1x96xf32> to vector<1x64xf32>
    %28 = arith.negf %27 : vector<1x64xf32>
    %29 = math.exp %28 : vector<1x64xf32>
    %cst_16 = arith.constant 1.000000e+00 : f32
    %30 = vector.broadcast %cst_16 : f32 to vector<1x64xf32>
    %31 = arith.addf %30, %29 : vector<1x64xf32>
    %32 = arith.divf %30, %31 : vector<1x64xf32>
    %33 = vector.extract_strided_slice %26 {offsets = [0, 64], sizes = [1, 32], strides = [1, 1]} : vector<1x96xf32> to vector<1x32xf32>
    %34 = math.tanh %33 : vector<1x32xf32>
    %35 = vector.extract_strided_slice %23 {offsets = [0, 96], sizes = [1, 32], strides = [1, 1]} : vector<1x128xf32> to vector<1x32xf32>
    %36 = vector.extract_strided_slice %32 {offsets = [0, 0], sizes = [1, 32], strides = [1, 1]} : vector<1x64xf32> to vector<1x32xf32>
    %37 = arith.mulf %36, %18 : vector<1x32xf32>
    %38 = arith.mulf %35, %34 : vector<1x32xf32>
    %39 = arith.addf %37, %38 : vector<1x32xf32>
    %40 = vector.extract_strided_slice %32 {offsets = [0, 32], sizes = [1, 32], strides = [1, 1]} : vector<1x64xf32> to vector<1x32xf32>
    %41 = math.tanh %39 : vector<1x32xf32>
    %42 = arith.mulf %40, %41 : vector<1x32xf32>
    %43 = vector.extract_strided_slice %22 {offsets = [1, 0], sizes = [1, 128], strides = [1, 1]} : vector<8x128xf32> to vector<1x128xf32>
    %44 = vector.extract_strided_slice %43 {offsets = [0, 0], sizes = [1, 96], strides = [1, 1]} : vector<1x128xf32> to vector<1x96xf32>
    %cst_17 = arith.constant dense<0.000000e+00> : vector<1x96xf32>
    %45 = tpu.matmul %42, %16, %cst_17 {dimension_numbers = #tpu.dot_dimension_numbers<[1], [0], [0], [1], [0, 0, 1, 1], [], []>} : vector<1x32xf32>, vector<32x96xf32>, vector<1x96xf32> -> vector<1x96xf32>
    %46 = arith.addf %44, %45 : vector<1x96xf32>
    %47 = vector.extract_strided_slice %46 {offsets = [0, 0], sizes = [1, 64], strides = [1, 1]} : vector<1x96xf32> to vector<1x64xf32>
    %48 = arith.negf %47 : vector<1x64xf32>
    %49 = math.exp %48 : vector<1x64xf32>
    %cst_18 = arith.constant 1.000000e+00 : f32
    %50 = vector.broadcast %cst_18 : f32 to vector<1x64xf32>
    %51 = arith.addf %50, %49 : vector<1x64xf32>
    %52 = arith.divf %50, %51 : vector<1x64xf32>
    %53 = vector.extract_strided_slice %46 {offsets = [0, 64], sizes = [1, 32], strides = [1, 1]} : vector<1x96xf32> to vector<1x32xf32>
    %54 = math.tanh %53 : vector<1x32xf32>
    %55 = vector.extract_strided_slice %43 {offsets = [0, 96], sizes = [1, 32], strides = [1, 1]} : vector<1x128xf32> to vector<1x32xf32>
    %56 = vector.extract_strided_slice %52 {offsets = [0, 0], sizes = [1, 32], strides = [1, 1]} : vector<1x64xf32> to vector<1x32xf32>
    %57 = arith.mulf %56, %39 : vector<1x32xf32>
    %58 = arith.mulf %55, %54 : vector<1x32xf32>
    %59 = arith.addf %57, %58 : vector<1x32xf32>
    %60 = vector.extract_strided_slice %52 {offsets = [0, 32], sizes = [1, 32], strides = [1, 1]} : vector<1x64xf32> to vector<1x32xf32>
    %61 = math.tanh %59 : vector<1x32xf32>
    %62 = arith.mulf %60, %61 : vector<1x32xf32>
    %63 = vector.extract_strided_slice %22 {offsets = [2, 0], sizes = [1, 128], strides = [1, 1]} : vector<8x128xf32> to vector<1x128xf32>
    %64 = vector.extract_strided_slice %63 {offsets = [0, 0], sizes = [1, 96], strides = [1, 1]} : vector<1x128xf32> to vector<1x96xf32>
    %cst_19 = arith.constant dense<0.000000e+00> : vector<1x96xf32>
    %65 = tpu.matmul %62, %16, %cst_19 {dimension_numbers = #tpu.dot_dimension_numbers<[1], [0], [0], [1], [0, 0, 1, 1], [], []>} : vector<1x32xf32>, vector<32x96xf32>, vector<1x96xf32> -> vector<1x96xf32>
    %66 = arith.addf %64, %65 : vector<1x96xf32>
    %67 = vector.extract_strided_slice %66 {offsets = [0, 0], sizes = [1, 64], strides = [1, 1]} : vector<1x96xf32> to vector<1x64xf32>
    %68 = arith.negf %67 : vector<1x64xf32>
    %69 = math.exp %68 : vector<1x64xf32>
    %cst_20 = arith.constant 1.000000e+00 : f32
    %70 = vector.broadcast %cst_20 : f32 to vector<1x64xf32>
    %71 = arith.addf %70, %69 : vector<1x64xf32>
    %72 = arith.divf %70, %71 : vector<1x64xf32>
    %73 = vector.extract_strided_slice %66 {offsets = [0, 64], sizes = [1, 32], strides = [1, 1]} : vector<1x96xf32> to vector<1x32xf32>
    %74 = math.tanh %73 : vector<1x32xf32>
    %75 = vector.extract_strided_slice %63 {offsets = [0, 96], sizes = [1, 32], strides = [1, 1]} : vector<1x128xf32> to vector<1x32xf32>
    %76 = vector.extract_strided_slice %72 {offsets = [0, 0], sizes = [1, 32], strides = [1, 1]} : vector<1x64xf32> to vector<1x32xf32>
    %77 = arith.mulf %76, %59 : vector<1x32xf32>
    %78 = arith.mulf %75, %74 : vector<1x32xf32>
    %79 = arith.addf %77, %78 : vector<1x32xf32>
    %80 = vector.extract_strided_slice %72 {offsets = [0, 32], sizes = [1, 32], strides = [1, 1]} : vector<1x64xf32> to vector<1x32xf32>
    %81 = math.tanh %79 : vector<1x32xf32>
    %82 = arith.mulf %80, %81 : vector<1x32xf32>
    %83 = vector.extract_strided_slice %22 {offsets = [3, 0], sizes = [1, 128], strides = [1, 1]} : vector<8x128xf32> to vector<1x128xf32>
    %84 = vector.extract_strided_slice %83 {offsets = [0, 0], sizes = [1, 96], strides = [1, 1]} : vector<1x128xf32> to vector<1x96xf32>
    %cst_21 = arith.constant dense<0.000000e+00> : vector<1x96xf32>
    %85 = tpu.matmul %82, %16, %cst_21 {dimension_numbers = #tpu.dot_dimension_numbers<[1], [0], [0], [1], [0, 0, 1, 1], [], []>} : vector<1x32xf32>, vector<32x96xf32>, vector<1x96xf32> -> vector<1x96xf32>
    %86 = arith.addf %84, %85 : vector<1x96xf32>
    %87 = vector.extract_strided_slice %86 {offsets = [0, 0], sizes = [1, 64], strides = [1, 1]} : vector<1x96xf32> to vector<1x64xf32>
    %88 = arith.negf %87 : vector<1x64xf32>
    %89 = math.exp %88 : vector<1x64xf32>
    %cst_22 = arith.constant 1.000000e+00 : f32
    %90 = vector.broadcast %cst_22 : f32 to vector<1x64xf32>
    %91 = arith.addf %90, %89 : vector<1x64xf32>
    %92 = arith.divf %90, %91 : vector<1x64xf32>
    %93 = vector.extract_strided_slice %86 {offsets = [0, 64], sizes = [1, 32], strides = [1, 1]} : vector<1x96xf32> to vector<1x32xf32>
    %94 = math.tanh %93 : vector<1x32xf32>
    %95 = vector.extract_strided_slice %83 {offsets = [0, 96], sizes = [1, 32], strides = [1, 1]} : vector<1x128xf32> to vector<1x32xf32>
    %96 = vector.extract_strided_slice %92 {offsets = [0, 0], sizes = [1, 32], strides = [1, 1]} : vector<1x64xf32> to vector<1x32xf32>
    %97 = arith.mulf %96, %79 : vector<1x32xf32>
    %98 = arith.mulf %95, %94 : vector<1x32xf32>
    %99 = arith.addf %97, %98 : vector<1x32xf32>
    %100 = vector.extract_strided_slice %92 {offsets = [0, 32], sizes = [1, 32], strides = [1, 1]} : vector<1x64xf32> to vector<1x32xf32>
    %101 = math.tanh %99 : vector<1x32xf32>
    %102 = arith.mulf %100, %101 : vector<1x32xf32>
    %103 = vector.extract_strided_slice %22 {offsets = [4, 0], sizes = [1, 128], strides = [1, 1]} : vector<8x128xf32> to vector<1x128xf32>
    %104 = vector.extract_strided_slice %103 {offsets = [0, 0], sizes = [1, 96], strides = [1, 1]} : vector<1x128xf32> to vector<1x96xf32>
    %cst_23 = arith.constant dense<0.000000e+00> : vector<1x96xf32>
    %105 = tpu.matmul %102, %16, %cst_23 {dimension_numbers = #tpu.dot_dimension_numbers<[1], [0], [0], [1], [0, 0, 1, 1], [], []>} : vector<1x32xf32>, vector<32x96xf32>, vector<1x96xf32> -> vector<1x96xf32>
    %106 = arith.addf %104, %105 : vector<1x96xf32>
    %107 = vector.extract_strided_slice %106 {offsets = [0, 0], sizes = [1, 64], strides = [1, 1]} : vector<1x96xf32> to vector<1x64xf32>
    %108 = arith.negf %107 : vector<1x64xf32>
    %109 = math.exp %108 : vector<1x64xf32>
    %cst_24 = arith.constant 1.000000e+00 : f32
    %110 = vector.broadcast %cst_24 : f32 to vector<1x64xf32>
    %111 = arith.addf %110, %109 : vector<1x64xf32>
    %112 = arith.divf %110, %111 : vector<1x64xf32>
    %113 = vector.extract_strided_slice %106 {offsets = [0, 64], sizes = [1, 32], strides = [1, 1]} : vector<1x96xf32> to vector<1x32xf32>
    %114 = math.tanh %113 : vector<1x32xf32>
    %115 = vector.extract_strided_slice %103 {offsets = [0, 96], sizes = [1, 32], strides = [1, 1]} : vector<1x128xf32> to vector<1x32xf32>
    %116 = vector.extract_strided_slice %112 {offsets = [0, 0], sizes = [1, 32], strides = [1, 1]} : vector<1x64xf32> to vector<1x32xf32>
    %117 = arith.mulf %116, %99 : vector<1x32xf32>
    %118 = arith.mulf %115, %114 : vector<1x32xf32>
    %119 = arith.addf %117, %118 : vector<1x32xf32>
    %120 = vector.extract_strided_slice %112 {offsets = [0, 32], sizes = [1, 32], strides = [1, 1]} : vector<1x64xf32> to vector<1x32xf32>
    %121 = math.tanh %119 : vector<1x32xf32>
    %122 = arith.mulf %120, %121 : vector<1x32xf32>
    %123 = vector.extract_strided_slice %22 {offsets = [5, 0], sizes = [1, 128], strides = [1, 1]} : vector<8x128xf32> to vector<1x128xf32>
    %124 = vector.extract_strided_slice %123 {offsets = [0, 0], sizes = [1, 96], strides = [1, 1]} : vector<1x128xf32> to vector<1x96xf32>
    %cst_25 = arith.constant dense<0.000000e+00> : vector<1x96xf32>
    %125 = tpu.matmul %122, %16, %cst_25 {dimension_numbers = #tpu.dot_dimension_numbers<[1], [0], [0], [1], [0, 0, 1, 1], [], []>} : vector<1x32xf32>, vector<32x96xf32>, vector<1x96xf32> -> vector<1x96xf32>
    %126 = arith.addf %124, %125 : vector<1x96xf32>
    %127 = vector.extract_strided_slice %126 {offsets = [0, 0], sizes = [1, 64], strides = [1, 1]} : vector<1x96xf32> to vector<1x64xf32>
    %128 = arith.negf %127 : vector<1x64xf32>
    %129 = math.exp %128 : vector<1x64xf32>
    %cst_26 = arith.constant 1.000000e+00 : f32
    %130 = vector.broadcast %cst_26 : f32 to vector<1x64xf32>
    %131 = arith.addf %130, %129 : vector<1x64xf32>
    %132 = arith.divf %130, %131 : vector<1x64xf32>
    %133 = vector.extract_strided_slice %126 {offsets = [0, 64], sizes = [1, 32], strides = [1, 1]} : vector<1x96xf32> to vector<1x32xf32>
    %134 = math.tanh %133 : vector<1x32xf32>
    %135 = vector.extract_strided_slice %123 {offsets = [0, 96], sizes = [1, 32], strides = [1, 1]} : vector<1x128xf32> to vector<1x32xf32>
    %136 = vector.extract_strided_slice %132 {offsets = [0, 0], sizes = [1, 32], strides = [1, 1]} : vector<1x64xf32> to vector<1x32xf32>
    %137 = arith.mulf %136, %119 : vector<1x32xf32>
    %138 = arith.mulf %135, %134 : vector<1x32xf32>
    %139 = arith.addf %137, %138 : vector<1x32xf32>
    %140 = vector.extract_strided_slice %132 {offsets = [0, 32], sizes = [1, 32], strides = [1, 1]} : vector<1x64xf32> to vector<1x32xf32>
    %141 = math.tanh %139 : vector<1x32xf32>
    %142 = arith.mulf %140, %141 : vector<1x32xf32>
    %143 = vector.extract_strided_slice %22 {offsets = [6, 0], sizes = [1, 128], strides = [1, 1]} : vector<8x128xf32> to vector<1x128xf32>
    %144 = vector.extract_strided_slice %143 {offsets = [0, 0], sizes = [1, 96], strides = [1, 1]} : vector<1x128xf32> to vector<1x96xf32>
    %cst_27 = arith.constant dense<0.000000e+00> : vector<1x96xf32>
    %145 = tpu.matmul %142, %16, %cst_27 {dimension_numbers = #tpu.dot_dimension_numbers<[1], [0], [0], [1], [0, 0, 1, 1], [], []>} : vector<1x32xf32>, vector<32x96xf32>, vector<1x96xf32> -> vector<1x96xf32>
    %146 = arith.addf %144, %145 : vector<1x96xf32>
    %147 = vector.extract_strided_slice %146 {offsets = [0, 0], sizes = [1, 64], strides = [1, 1]} : vector<1x96xf32> to vector<1x64xf32>
    %148 = arith.negf %147 : vector<1x64xf32>
    %149 = math.exp %148 : vector<1x64xf32>
    %cst_28 = arith.constant 1.000000e+00 : f32
    %150 = vector.broadcast %cst_28 : f32 to vector<1x64xf32>
    %151 = arith.addf %150, %149 : vector<1x64xf32>
    %152 = arith.divf %150, %151 : vector<1x64xf32>
    %153 = vector.extract_strided_slice %146 {offsets = [0, 64], sizes = [1, 32], strides = [1, 1]} : vector<1x96xf32> to vector<1x32xf32>
    %154 = math.tanh %153 : vector<1x32xf32>
    %155 = vector.extract_strided_slice %143 {offsets = [0, 96], sizes = [1, 32], strides = [1, 1]} : vector<1x128xf32> to vector<1x32xf32>
    %156 = vector.extract_strided_slice %152 {offsets = [0, 0], sizes = [1, 32], strides = [1, 1]} : vector<1x64xf32> to vector<1x32xf32>
    %157 = arith.mulf %156, %139 : vector<1x32xf32>
    %158 = arith.mulf %155, %154 : vector<1x32xf32>
    %159 = arith.addf %157, %158 : vector<1x32xf32>
    %160 = vector.extract_strided_slice %152 {offsets = [0, 32], sizes = [1, 32], strides = [1, 1]} : vector<1x64xf32> to vector<1x32xf32>
    %161 = math.tanh %159 : vector<1x32xf32>
    %162 = arith.mulf %160, %161 : vector<1x32xf32>
    %163 = vector.extract_strided_slice %22 {offsets = [7, 0], sizes = [1, 128], strides = [1, 1]} : vector<8x128xf32> to vector<1x128xf32>
    %164 = vector.extract_strided_slice %163 {offsets = [0, 0], sizes = [1, 96], strides = [1, 1]} : vector<1x128xf32> to vector<1x96xf32>
    %cst_29 = arith.constant dense<0.000000e+00> : vector<1x96xf32>
    %165 = tpu.matmul %162, %16, %cst_29 {dimension_numbers = #tpu.dot_dimension_numbers<[1], [0], [0], [1], [0, 0, 1, 1], [], []>} : vector<1x32xf32>, vector<32x96xf32>, vector<1x96xf32> -> vector<1x96xf32>
    %166 = arith.addf %164, %165 : vector<1x96xf32>
    %167 = vector.extract_strided_slice %166 {offsets = [0, 0], sizes = [1, 64], strides = [1, 1]} : vector<1x96xf32> to vector<1x64xf32>
    %168 = arith.negf %167 : vector<1x64xf32>
    %169 = math.exp %168 : vector<1x64xf32>
    %cst_30 = arith.constant 1.000000e+00 : f32
    %170 = vector.broadcast %cst_30 : f32 to vector<1x64xf32>
    %171 = arith.addf %170, %169 : vector<1x64xf32>
    %172 = arith.divf %170, %171 : vector<1x64xf32>
    %173 = vector.extract_strided_slice %166 {offsets = [0, 64], sizes = [1, 32], strides = [1, 1]} : vector<1x96xf32> to vector<1x32xf32>
    %174 = math.tanh %173 : vector<1x32xf32>
    %175 = vector.extract_strided_slice %163 {offsets = [0, 96], sizes = [1, 32], strides = [1, 1]} : vector<1x128xf32> to vector<1x32xf32>
    %176 = vector.extract_strided_slice %172 {offsets = [0, 0], sizes = [1, 32], strides = [1, 1]} : vector<1x64xf32> to vector<1x32xf32>
    %177 = arith.mulf %176, %159 : vector<1x32xf32>
    %178 = arith.mulf %175, %174 : vector<1x32xf32>
    %179 = arith.addf %177, %178 : vector<1x32xf32>
    %180 = vector.extract_strided_slice %172 {offsets = [0, 32], sizes = [1, 32], strides = [1, 1]} : vector<1x64xf32> to vector<1x32xf32>
    %181 = math.tanh %179 : vector<1x32xf32>
    %182 = arith.mulf %180, %181 : vector<1x32xf32>
    %183 = tpu.concatenate %42, %62, %82, %102, %122, %142, %162, %182 in 0 : vector<1x32xf32>, vector<1x32xf32>, vector<1x32xf32>, vector<1x32xf32>, vector<1x32xf32>, vector<1x32xf32>, vector<1x32xf32>, vector<1x32xf32> -> vector<8x32xf32>
    %184 = arith.index_cast %20 : i32 to index
    %c0_31 = arith.constant 0 : index
    %185 = vector.load %arg10[%184, %c0_31] : memref<16x32xf32, #tpu.memory_space<vmem>>, vector<8x32xf32>
    tpu.vector_store %arg10[%184, %c0_31], %183 {strides = array<i32>} : memref<16x32xf32, #tpu.memory_space<vmem>>, vector<8x32xf32>,
    %c1_i32 = arith.constant 1 : i32
    %c8_i32_32 = arith.constant 8 : i32
    %186 = arith.muli %c1_i32, %c8_i32_32 : i32
    %187 = tpu.assume_multiple %186, 8 : i32
    %188 = arith.index_cast %187 : i32 to index
    %c0_33 = arith.constant 0 : index
    %189 = vector.load %arg9[%188, %c0_33] : memref<16x128xf32, #tpu.memory_space<vmem>>, vector<8x128xf32>
    %190 = vector.extract_strided_slice %189 {offsets = [0, 0], sizes = [1, 128], strides = [1, 1]} : vector<8x128xf32> to vector<1x128xf32>
    %191 = vector.extract_strided_slice %190 {offsets = [0, 0], sizes = [1, 96], strides = [1, 1]} : vector<1x128xf32> to vector<1x96xf32>
    %cst_34 = arith.constant dense<0.000000e+00> : vector<1x96xf32>
    %192 = tpu.matmul %182, %16, %cst_34 {dimension_numbers = #tpu.dot_dimension_numbers<[1], [0], [0], [1], [0, 0, 1, 1], [], []>} : vector<1x32xf32>, vector<32x96xf32>, vector<1x96xf32> -> vector<1x96xf32>
    %193 = arith.addf %191, %192 : vector<1x96xf32>
    %194 = vector.extract_strided_slice %193 {offsets = [0, 0], sizes = [1, 64], strides = [1, 1]} : vector<1x96xf32> to vector<1x64xf32>
    %195 = arith.negf %194 : vector<1x64xf32>
    %196 = math.exp %195 : vector<1x64xf32>
    %cst_35 = arith.constant 1.000000e+00 : f32
    %197 = vector.broadcast %cst_35 : f32 to vector<1x64xf32>
    %198 = arith.addf %197, %196 : vector<1x64xf32>
    %199 = arith.divf %197, %198 : vector<1x64xf32>
    %200 = vector.extract_strided_slice %193 {offsets = [0, 64], sizes = [1, 32], strides = [1, 1]} : vector<1x96xf32> to vector<1x32xf32>
    %201 = math.tanh %200 : vector<1x32xf32>
    %202 = vector.extract_strided_slice %190 {offsets = [0, 96], sizes = [1, 32], strides = [1, 1]} : vector<1x128xf32> to vector<1x32xf32>
    %203 = vector.extract_strided_slice %199 {offsets = [0, 0], sizes = [1, 32], strides = [1, 1]} : vector<1x64xf32> to vector<1x32xf32>
    %204 = arith.mulf %203, %179 : vector<1x32xf32>
    %205 = arith.mulf %202, %201 : vector<1x32xf32>
    %206 = arith.addf %204, %205 : vector<1x32xf32>
    %207 = vector.extract_strided_slice %199 {offsets = [0, 32], sizes = [1, 32], strides = [1, 1]} : vector<1x64xf32> to vector<1x32xf32>
    %208 = math.tanh %206 : vector<1x32xf32>
    %209 = arith.mulf %207, %208 : vector<1x32xf32>
    %210 = vector.extract_strided_slice %189 {offsets = [1, 0], sizes = [1, 128], strides = [1, 1]} : vector<8x128xf32> to vector<1x128xf32>
    %211 = vector.extract_strided_slice %210 {offsets = [0, 0], sizes = [1, 96], strides = [1, 1]} : vector<1x128xf32> to vector<1x96xf32>
    %cst_36 = arith.constant dense<0.000000e+00> : vector<1x96xf32>
    %212 = tpu.matmul %209, %16, %cst_36 {dimension_numbers = #tpu.dot_dimension_numbers<[1], [0], [0], [1], [0, 0, 1, 1], [], []>} : vector<1x32xf32>, vector<32x96xf32>, vector<1x96xf32> -> vector<1x96xf32>
    %213 = arith.addf %211, %212 : vector<1x96xf32>
    %214 = vector.extract_strided_slice %213 {offsets = [0, 0], sizes = [1, 64], strides = [1, 1]} : vector<1x96xf32> to vector<1x64xf32>
    %215 = arith.negf %214 : vector<1x64xf32>
    %216 = math.exp %215 : vector<1x64xf32>
    %cst_37 = arith.constant 1.000000e+00 : f32
    %217 = vector.broadcast %cst_37 : f32 to vector<1x64xf32>
    %218 = arith.addf %217, %216 : vector<1x64xf32>
    %219 = arith.divf %217, %218 : vector<1x64xf32>
    %220 = vector.extract_strided_slice %213 {offsets = [0, 64], sizes = [1, 32], strides = [1, 1]} : vector<1x96xf32> to vector<1x32xf32>
    %221 = math.tanh %220 : vector<1x32xf32>
    %222 = vector.extract_strided_slice %210 {offsets = [0, 96], sizes = [1, 32], strides = [1, 1]} : vector<1x128xf32> to vector<1x32xf32>
    %223 = vector.extract_strided_slice %219 {offsets = [0, 0], sizes = [1, 32], strides = [1, 1]} : vector<1x64xf32> to vector<1x32xf32>
    %224 = arith.mulf %223, %206 : vector<1x32xf32>
    %225 = arith.mulf %222, %221 : vector<1x32xf32>
    %226 = arith.addf %224, %225 : vector<1x32xf32>
    %227 = vector.extract_strided_slice %219 {offsets = [0, 32], sizes = [1, 32], strides = [1, 1]} : vector<1x64xf32> to vector<1x32xf32>
    %228 = math.tanh %226 : vector<1x32xf32>
    %229 = arith.mulf %227, %228 : vector<1x32xf32>
    %230 = vector.extract_strided_slice %189 {offsets = [2, 0], sizes = [1, 128], strides = [1, 1]} : vector<8x128xf32> to vector<1x128xf32>
    %231 = vector.extract_strided_slice %230 {offsets = [0, 0], sizes = [1, 96], strides = [1, 1]} : vector<1x128xf32> to vector<1x96xf32>
    %cst_38 = arith.constant dense<0.000000e+00> : vector<1x96xf32>
    %232 = tpu.matmul %229, %16, %cst_38 {dimension_numbers = #tpu.dot_dimension_numbers<[1], [0], [0], [1], [0, 0, 1, 1], [], []>} : vector<1x32xf32>, vector<32x96xf32>, vector<1x96xf32> -> vector<1x96xf32>
    %233 = arith.addf %231, %232 : vector<1x96xf32>
    %234 = vector.extract_strided_slice %233 {offsets = [0, 0], sizes = [1, 64], strides = [1, 1]} : vector<1x96xf32> to vector<1x64xf32>
    %235 = arith.negf %234 : vector<1x64xf32>
    %236 = math.exp %235 : vector<1x64xf32>
    %cst_39 = arith.constant 1.000000e+00 : f32
    %237 = vector.broadcast %cst_39 : f32 to vector<1x64xf32>
    %238 = arith.addf %237, %236 : vector<1x64xf32>
    %239 = arith.divf %237, %238 : vector<1x64xf32>
    %240 = vector.extract_strided_slice %233 {offsets = [0, 64], sizes = [1, 32], strides = [1, 1]} : vector<1x96xf32> to vector<1x32xf32>
    %241 = math.tanh %240 : vector<1x32xf32>
    %242 = vector.extract_strided_slice %230 {offsets = [0, 96], sizes = [1, 32], strides = [1, 1]} : vector<1x128xf32> to vector<1x32xf32>
    %243 = vector.extract_strided_slice %239 {offsets = [0, 0], sizes = [1, 32], strides = [1, 1]} : vector<1x64xf32> to vector<1x32xf32>
    %244 = arith.mulf %243, %226 : vector<1x32xf32>
    %245 = arith.mulf %242, %241 : vector<1x32xf32>
    %246 = arith.addf %244, %245 : vector<1x32xf32>
    %247 = vector.extract_strided_slice %239 {offsets = [0, 32], sizes = [1, 32], strides = [1, 1]} : vector<1x64xf32> to vector<1x32xf32>
    %248 = math.tanh %246 : vector<1x32xf32>
    %249 = arith.mulf %247, %248 : vector<1x32xf32>
    %250 = vector.extract_strided_slice %189 {offsets = [3, 0], sizes = [1, 128], strides = [1, 1]} : vector<8x128xf32> to vector<1x128xf32>
    %251 = vector.extract_strided_slice %250 {offsets = [0, 0], sizes = [1, 96], strides = [1, 1]} : vector<1x128xf32> to vector<1x96xf32>
    %cst_40 = arith.constant dense<0.000000e+00> : vector<1x96xf32>
    %252 = tpu.matmul %249, %16, %cst_40 {dimension_numbers = #tpu.dot_dimension_numbers<[1], [0], [0], [1], [0, 0, 1, 1], [], []>} : vector<1x32xf32>, vector<32x96xf32>, vector<1x96xf32> -> vector<1x96xf32>
    %253 = arith.addf %251, %252 : vector<1x96xf32>
    %254 = vector.extract_strided_slice %253 {offsets = [0, 0], sizes = [1, 64], strides = [1, 1]} : vector<1x96xf32> to vector<1x64xf32>
    %255 = arith.negf %254 : vector<1x64xf32>
    %256 = math.exp %255 : vector<1x64xf32>
    %cst_41 = arith.constant 1.000000e+00 : f32
    %257 = vector.broadcast %cst_41 : f32 to vector<1x64xf32>
    %258 = arith.addf %257, %256 : vector<1x64xf32>
    %259 = arith.divf %257, %258 : vector<1x64xf32>
    %260 = vector.extract_strided_slice %253 {offsets = [0, 64], sizes = [1, 32], strides = [1, 1]} : vector<1x96xf32> to vector<1x32xf32>
    %261 = math.tanh %260 : vector<1x32xf32>
    %262 = vector.extract_strided_slice %250 {offsets = [0, 96], sizes = [1, 32], strides = [1, 1]} : vector<1x128xf32> to vector<1x32xf32>
    %263 = vector.extract_strided_slice %259 {offsets = [0, 0], sizes = [1, 32], strides = [1, 1]} : vector<1x64xf32> to vector<1x32xf32>
    %264 = arith.mulf %263, %246 : vector<1x32xf32>
    %265 = arith.mulf %262, %261 : vector<1x32xf32>
    %266 = arith.addf %264, %265 : vector<1x32xf32>
    %267 = vector.extract_strided_slice %259 {offsets = [0, 32], sizes = [1, 32], strides = [1, 1]} : vector<1x64xf32> to vector<1x32xf32>
    %268 = math.tanh %266 : vector<1x32xf32>
    %269 = arith.mulf %267, %268 : vector<1x32xf32>
    %270 = vector.extract_strided_slice %189 {offsets = [4, 0], sizes = [1, 128], strides = [1, 1]} : vector<8x128xf32> to vector<1x128xf32>
    %271 = vector.extract_strided_slice %270 {offsets = [0, 0], sizes = [1, 96], strides = [1, 1]} : vector<1x128xf32> to vector<1x96xf32>
    %cst_42 = arith.constant dense<0.000000e+00> : vector<1x96xf32>
    %272 = tpu.matmul %269, %16, %cst_42 {dimension_numbers = #tpu.dot_dimension_numbers<[1], [0], [0], [1], [0, 0, 1, 1], [], []>} : vector<1x32xf32>, vector<32x96xf32>, vector<1x96xf32> -> vector<1x96xf32>
    %273 = arith.addf %271, %272 : vector<1x96xf32>
    %274 = vector.extract_strided_slice %273 {offsets = [0, 0], sizes = [1, 64], strides = [1, 1]} : vector<1x96xf32> to vector<1x64xf32>
    %275 = arith.negf %274 : vector<1x64xf32>
    %276 = math.exp %275 : vector<1x64xf32>
    %cst_43 = arith.constant 1.000000e+00 : f32
    %277 = vector.broadcast %cst_43 : f32 to vector<1x64xf32>
    %278 = arith.addf %277, %276 : vector<1x64xf32>
    %279 = arith.divf %277, %278 : vector<1x64xf32>
    %280 = vector.extract_strided_slice %273 {offsets = [0, 64], sizes = [1, 32], strides = [1, 1]} : vector<1x96xf32> to vector<1x32xf32>
    %281 = math.tanh %280 : vector<1x32xf32>
    %282 = vector.extract_strided_slice %270 {offsets = [0, 96], sizes = [1, 32], strides = [1, 1]} : vector<1x128xf32> to vector<1x32xf32>
    %283 = vector.extract_strided_slice %279 {offsets = [0, 0], sizes = [1, 32], strides = [1, 1]} : vector<1x64xf32> to vector<1x32xf32>
    %284 = arith.mulf %283, %266 : vector<1x32xf32>
    %285 = arith.mulf %282, %281 : vector<1x32xf32>
    %286 = arith.addf %284, %285 : vector<1x32xf32>
    %287 = vector.extract_strided_slice %279 {offsets = [0, 32], sizes = [1, 32], strides = [1, 1]} : vector<1x64xf32> to vector<1x32xf32>
    %288 = math.tanh %286 : vector<1x32xf32>
    %289 = arith.mulf %287, %288 : vector<1x32xf32>
    %290 = vector.extract_strided_slice %189 {offsets = [5, 0], sizes = [1, 128], strides = [1, 1]} : vector<8x128xf32> to vector<1x128xf32>
    %291 = vector.extract_strided_slice %290 {offsets = [0, 0], sizes = [1, 96], strides = [1, 1]} : vector<1x128xf32> to vector<1x96xf32>
    %cst_44 = arith.constant dense<0.000000e+00> : vector<1x96xf32>
    %292 = tpu.matmul %289, %16, %cst_44 {dimension_numbers = #tpu.dot_dimension_numbers<[1], [0], [0], [1], [0, 0, 1, 1], [], []>} : vector<1x32xf32>, vector<32x96xf32>, vector<1x96xf32> -> vector<1x96xf32>
    %293 = arith.addf %291, %292 : vector<1x96xf32>
    %294 = vector.extract_strided_slice %293 {offsets = [0, 0], sizes = [1, 64], strides = [1, 1]} : vector<1x96xf32> to vector<1x64xf32>
    %295 = arith.negf %294 : vector<1x64xf32>
    %296 = math.exp %295 : vector<1x64xf32>
    %cst_45 = arith.constant 1.000000e+00 : f32
    %297 = vector.broadcast %cst_45 : f32 to vector<1x64xf32>
    %298 = arith.addf %297, %296 : vector<1x64xf32>
    %299 = arith.divf %297, %298 : vector<1x64xf32>
    %300 = vector.extract_strided_slice %293 {offsets = [0, 64], sizes = [1, 32], strides = [1, 1]} : vector<1x96xf32> to vector<1x32xf32>
    %301 = math.tanh %300 : vector<1x32xf32>
    %302 = vector.extract_strided_slice %290 {offsets = [0, 96], sizes = [1, 32], strides = [1, 1]} : vector<1x128xf32> to vector<1x32xf32>
    %303 = vector.extract_strided_slice %299 {offsets = [0, 0], sizes = [1, 32], strides = [1, 1]} : vector<1x64xf32> to vector<1x32xf32>
    %304 = arith.mulf %303, %286 : vector<1x32xf32>
    %305 = arith.mulf %302, %301 : vector<1x32xf32>
    %306 = arith.addf %304, %305 : vector<1x32xf32>
    %307 = vector.extract_strided_slice %299 {offsets = [0, 32], sizes = [1, 32], strides = [1, 1]} : vector<1x64xf32> to vector<1x32xf32>
    %308 = math.tanh %306 : vector<1x32xf32>
    %309 = arith.mulf %307, %308 : vector<1x32xf32>
    %310 = vector.extract_strided_slice %189 {offsets = [6, 0], sizes = [1, 128], strides = [1, 1]} : vector<8x128xf32> to vector<1x128xf32>
    %311 = vector.extract_strided_slice %310 {offsets = [0, 0], sizes = [1, 96], strides = [1, 1]} : vector<1x128xf32> to vector<1x96xf32>
    %cst_46 = arith.constant dense<0.000000e+00> : vector<1x96xf32>
    %312 = tpu.matmul %309, %16, %cst_46 {dimension_numbers = #tpu.dot_dimension_numbers<[1], [0], [0], [1], [0, 0, 1, 1], [], []>} : vector<1x32xf32>, vector<32x96xf32>, vector<1x96xf32> -> vector<1x96xf32>
    %313 = arith.addf %311, %312 : vector<1x96xf32>
    %314 = vector.extract_strided_slice %313 {offsets = [0, 0], sizes = [1, 64], strides = [1, 1]} : vector<1x96xf32> to vector<1x64xf32>
    %315 = arith.negf %314 : vector<1x64xf32>
    %316 = math.exp %315 : vector<1x64xf32>
    %cst_47 = arith.constant 1.000000e+00 : f32
    %317 = vector.broadcast %cst_47 : f32 to vector<1x64xf32>
    %318 = arith.addf %317, %316 : vector<1x64xf32>
    %319 = arith.divf %317, %318 : vector<1x64xf32>
    %320 = vector.extract_strided_slice %313 {offsets = [0, 64], sizes = [1, 32], strides = [1, 1]} : vector<1x96xf32> to vector<1x32xf32>
    %321 = math.tanh %320 : vector<1x32xf32>
    %322 = vector.extract_strided_slice %310 {offsets = [0, 96], sizes = [1, 32], strides = [1, 1]} : vector<1x128xf32> to vector<1x32xf32>
    %323 = vector.extract_strided_slice %319 {offsets = [0, 0], sizes = [1, 32], strides = [1, 1]} : vector<1x64xf32> to vector<1x32xf32>
    %324 = arith.mulf %323, %306 : vector<1x32xf32>
    %325 = arith.mulf %322, %321 : vector<1x32xf32>
    %326 = arith.addf %324, %325 : vector<1x32xf32>
    %327 = vector.extract_strided_slice %319 {offsets = [0, 32], sizes = [1, 32], strides = [1, 1]} : vector<1x64xf32> to vector<1x32xf32>
    %328 = math.tanh %326 : vector<1x32xf32>
    %329 = arith.mulf %327, %328 : vector<1x32xf32>
    %330 = vector.extract_strided_slice %189 {offsets = [7, 0], sizes = [1, 128], strides = [1, 1]} : vector<8x128xf32> to vector<1x128xf32>
    %331 = vector.extract_strided_slice %330 {offsets = [0, 0], sizes = [1, 96], strides = [1, 1]} : vector<1x128xf32> to vector<1x96xf32>
    %cst_48 = arith.constant dense<0.000000e+00> : vector<1x96xf32>
    %332 = tpu.matmul %329, %16, %cst_48 {dimension_numbers = #tpu.dot_dimension_numbers<[1], [0], [0], [1], [0, 0, 1, 1], [], []>} : vector<1x32xf32>, vector<32x96xf32>, vector<1x96xf32> -> vector<1x96xf32>
    %333 = arith.addf %331, %332 : vector<1x96xf32>
    %334 = vector.extract_strided_slice %333 {offsets = [0, 0], sizes = [1, 64], strides = [1, 1]} : vector<1x96xf32> to vector<1x64xf32>
    %335 = arith.negf %334 : vector<1x64xf32>
    %336 = math.exp %335 : vector<1x64xf32>
    %cst_49 = arith.constant 1.000000e+00 : f32
    %337 = vector.broadcast %cst_49 : f32 to vector<1x64xf32>
    %338 = arith.addf %337, %336 : vector<1x64xf32>
    %339 = arith.divf %337, %338 : vector<1x64xf32>
    %340 = vector.extract_strided_slice %333 {offsets = [0, 64], sizes = [1, 32], strides = [1, 1]} : vector<1x96xf32> to vector<1x32xf32>
    %341 = math.tanh %340 : vector<1x32xf32>
    %342 = vector.extract_strided_slice %330 {offsets = [0, 96], sizes = [1, 32], strides = [1, 1]} : vector<1x128xf32> to vector<1x32xf32>
    %343 = vector.extract_strided_slice %339 {offsets = [0, 0], sizes = [1, 32], strides = [1, 1]} : vector<1x64xf32> to vector<1x32xf32>
    %344 = arith.mulf %343, %326 : vector<1x32xf32>
    %345 = arith.mulf %342, %341 : vector<1x32xf32>
    %346 = arith.addf %344, %345 : vector<1x32xf32>
    %347 = vector.extract_strided_slice %339 {offsets = [0, 32], sizes = [1, 32], strides = [1, 1]} : vector<1x64xf32> to vector<1x32xf32>
    %348 = math.tanh %346 : vector<1x32xf32>
    %349 = arith.mulf %347, %348 : vector<1x32xf32>
    %350 = tpu.concatenate %209, %229, %249, %269, %289, %309, %329, %349 in 0 : vector<1x32xf32>, vector<1x32xf32>, vector<1x32xf32>, vector<1x32xf32>, vector<1x32xf32>, vector<1x32xf32>, vector<1x32xf32>, vector<1x32xf32> -> vector<8x32xf32>
    %351 = arith.index_cast %187 : i32 to index
    %c0_50 = arith.constant 0 : index
    %352 = vector.load %arg10[%351, %c0_50] : memref<16x32xf32, #tpu.memory_space<vmem>>, vector<8x32xf32>
    tpu.vector_store %arg10[%351, %c0_50], %350 {strides = array<i32>} : memref<16x32xf32, #tpu.memory_space<vmem>>, vector<8x32xf32>,
    %c2_i32 = arith.constant 2 : i32
    %c0_51 = arith.constant 0 : index
    %c0_52 = arith.constant 0 : index
    %353 = vector.load %arg10[%c0_51, %c0_52] : memref<16x32xf32, #tpu.memory_space<vmem>>, vector<16x32xf32>
    %c0_53 = arith.constant 0 : index
    %c0_54 = arith.constant 0 : index
    %354 = vector.load %arg4[%c0_53, %c0_54] : memref<32x2xf32, #tpu.memory_space<vmem>>, vector<32x2xf32>
    %cst_55 = arith.constant dense<0.000000e+00> : vector<16x2xf32>
    %355 = tpu.matmul %353, %354, %cst_55 {dimension_numbers = #tpu.dot_dimension_numbers<[1], [0], [0], [1], [0, 0, 1, 1], [], []>} : vector<16x32xf32>, vector<32x2xf32>, vector<16x2xf32> -> vector<16x2xf32>
    %c0_56 = arith.constant 0 : index
    %c0_57 = arith.constant 0 : index
    %356 = vector.load %arg5[%c0_56, %c0_57] : memref<1x2xf32, #tpu.memory_space<vmem>>, vector<1x2xf32>
    %357 = vector.broadcast %356 : vector<1x2xf32> to vector<16x2xf32>
    %358 = arith.addf %355, %357 : vector<16x2xf32>
    %c0_58 = arith.constant 0 : index
    %c0_59 = arith.constant 0 : index
    %359 = vector.load %arg8[%c0_58, %c0_59] : memref<16x2xf32, #tpu.memory_space<vmem>>, vector<16x2xf32>
    tpu.vector_store %arg8[%c0_58, %c0_59], %358 {strides = array<i32>} : memref<16x2xf32, #tpu.memory_space<vmem>>, vector<16x2xf32>,
    return
  }
}

</mosaic_0001>

<bundles_post_ra>
// kernel: tpu_custom_call.1
= control target key start
LH: loop header
LB: loop body
LE: loop exit
PB: predicated region body
PF: predicated region fallthrough
CT: control target
= control target key end

     0   :  { %vm36_vm0 = vcmask 64512   ;;  %vm118_vm1 = vcmask 261120   ;;  %v66_v14 = vlaneseq  ;;  %s1484_s20 = smov 96   ;;  %s1818_s1 = inlined_call_operand.vmem [shape: f32[8,128], index: 1, kind: input, shape index: {}]   ;;  %s1819_s0 = inlined_call_operand.vmem [shape: f32[16,8], index: 0, kind: input, shape index: {}]   ;;  %s1820_s3 = inlined_call_operand.vmem [shape: f32[32,96], index: 3, kind: input, shape index: {}]   ;;  %s1821_s2 = inlined_call_operand.vmem [shape: f32[1,128], index: 2, kind: input, shape index: {}]   ;;  %s1822_s6 = inlined_call_operand.vmem [shape: f32[1,32], index: 6, kind: input, shape index: {}]   ;;  %s1823_s7 = inlined_call_operand.vmem [shape: f32[1,32], index: 7, kind: input, shape index: {}]   ;;  %s1824_s4 = inlined_call_operand.vmem [shape: f32[32,2], index: 4, kind: input, shape index: {}]   ;;  %s1825_s5 = inlined_call_operand.vmem [shape: f32[1,2], index: 5, kind: input, shape index: {}]   ;;  %s1826_s8 = inlined_call_operand.vmem [shape: f32[16,2], index: 8, kind: output, shape index: {}]  }
   0x1   :  { %v31_v0 = vld [vmem:[%s1818_s1] sm:$0xff]  ;;  %v1539_v2 = vld [vmem:[%s1820_s3 + $0x18] sm:$0xff]  ;;  %v1545_v3 = vld [vmem:[%s1820_s3 + $0x10] sm:$0xff] }
   0x2   :  { %v29_v1 = vld [vmem:[%s1819_s0] sm:$0xff]  ;;  %58 = vmatpush.msra.mxu0 %v31_v0  ;;  %134 = vmatpush.msra.mxu1 %v1539_v2  ;;  %v1551_v4 = vld [vmem:[%s1820_s3 + $0x8] sm:$0xff]  ;;  %v1603_v17 = vand.u32 127, %v66_v14 }
   0x3   :  { %1305 = vmatmul.msk.f32.vlgmr.msra.gmra.mxu0 %vm36_vm0, %v29_v1  ;;  %197 = vmatpush.msra.mxu3 %v1539_v2  ;;  %v1559_v5 = vld [vmem:[%s1820_s3] sm:$0xff] }
   0x4   :  { %135 = vmatpush.msra.mxu1 %v1545_v3  ;;  %407 = vmatpush.msra.mxu2 %v1539_v2  ;;  %v115_v6 = vld [vmem:[%s1822_s6] sm:$0x1]  ;;  %vm68_vm4 = vcmp.ge.s32.totalorder %v1603_v17, 96 }
   0x5   :  { %198 = vmatpush.msra.mxu3 %v1545_v3  ;;  %547 = vmatpush.msrb.mxu0 %v1539_v2  ;;  %v1600_v7 = vld [vmem:[%s1821_s2] ss:$0 sm:$0xff]  ;;  %s1483_s2 = smov 32  }
   0x6   :  { %136 = vmatpush.msra.mxu1 %v1551_v4  ;;  %408 = vmatpush.msra.mxu2 %v1545_v3  ;;  %v116_v43 = vld [vmem:[%s1823_s7] sm:$0x1] }
   0x7   :  { %199 = vmatpush.msra.mxu3 %v1551_v4  ;;  %548 = vmatpush.msrb.mxu0 %v1545_v3 }
   0x8   :  { %137 = vmatpush.msra.mxu1 %v1559_v5  ;;  %409 = vmatpush.msra.mxu2 %v1551_v4 }
   0x9   :  { %1309 = vmatmul.msk.f32.vlgmr.msra.gmra.mxu1 %vm118_vm1, %v115_v6  ;;  %200 = vmatpush.msra.mxu3 %v1559_v5 }
   0xa   :  { %337 = vmatpush.msrb.mxu1 %v1539_v2  ;;  %410 = vmatpush.msra.mxu2 %v1559_v5 }
   0xb   :  { %267 = vmatpush.msrb.mxu3 %v1539_v2  ;;  %549 = vmatpush.msrb.mxu0 %v1551_v4 }
   0xc   :  { %338 = vmatpush.msrb.mxu1 %v1545_v3  ;;  %708 = vmatpush.msrb.mxu2 %v1539_v2 }
   0xd   :  { %268 = vmatpush.msrb.mxu3 %v1545_v3  ;;  %550 = vmatpush.msrb.mxu0 %v1559_v5 }
   0xe   :  { %339 = vmatpush.msrb.mxu1 %v1551_v4  ;;  %709 = vmatpush.msrb.mxu2 %v1545_v3 }
   0xf   :  { %269 = vmatpush.msrb.mxu3 %v1551_v4  ;;  %844 = vmatpush.msra.mxu0 %v1539_v2 }
  0x10   :  { %340 = vmatpush.msrb.mxu1 %v1559_v5  ;;  %710 = vmatpush.msrb.mxu2 %v1551_v4 }
  0x11   :  { %270 = vmatpush.msrb.mxu3 %v1559_v5  ;;  %845 = vmatpush.msra.mxu0 %v1545_v3 }
  0x12   :  { %617 = vmatpush.msra.mxu1 %v1539_v2  ;;  %711 = vmatpush.msrb.mxu2 %v1559_v5 }
  0x13   :  { %846 = vmatpush.msra.mxu0 %v1551_v4 }
  0x14   :  { %618 = vmatpush.msra.mxu1 %v1545_v3 }
  0x15   :  { %847 = vmatpush.msra.mxu0 %v1559_v5 }
  0x16   :  { %619 = vmatpush.msra.mxu1 %v1551_v4 }
  0x18   :  { %620 = vmatpush.msra.mxu1 %v1559_v5 }
  0x80   :  { %v60_v8 = vpop.f32.mrf.mxu0 }
  0x81   :  { %v61_v9 = vadd.f32 %v1600_v7, %v60_v8 }
  0x83   :  { %v1307_v10 = vmul.f32 -1.442695, %v61_v9 }
  0x85   :  { %1347 = vpow2.f32 %v1307_v10 }
  0x86   :  { %v139_v24 = vpop.f32.mrf.mxu1 }
  0x8b   :  { %v1348_v11 = vpop.eup %1347 }
  0x8c   :  { %v75_v12 = vadd.f32 1.0, %v1348_v11 }
  0x8e   :  { %1349 = vrcp.f32 %v75_v12  ;;  %v88_v18 = vand.u32 2147483648, %v75_v12  ;;  %v86_v20 = vand.u32 2147483647, %v75_v12  ;;  %vm82_vm3 = vweird.f32 %v75_v12 }
  0x90   :  { %v89_v22 = vor.u32 1.1754944e-38, %v88_v18  ;;  %vm87_vm6 = vcmp.eq.f32.partialorder %v86_v20, 8.507059e+37 }
  0x94   :  { %v1350_v13 = vpop.eup %1349 }
  0x95   :  { %v78_v15 = vmul.f32 %v1350_v13, %v75_v12  ;;  %vm83_vm2 = vweird.f32 %v1350_v13 }
  0x96   :  { %vm84_vm5 = vmor %vm82_vm3, %vm83_vm2 }
  0x97   :  { %v79_v16 = vsub.f32 1.0, %v78_v15 }
  0x99   :  { %v80_v19 = vmul.f32 %v1350_v13, %v79_v16 }
  0x9b   :  { %v81_v21 = vadd.f32 %v1350_v13, %v80_v19 }
  0x9d   :  { %v85_v23 = vsel %vm84_vm5, %v1350_v13, %v81_v21 }
  0x9e   :  { %v90_v25 = vsel %vm87_vm6, %v89_v22, %v85_v23  ;;  %vm669_vm6 = vcmask 1040384  }
  0x9f   :  { %v1608_v26 = vsel %vm68_vm4, %v90_v25, %v61_v9 }
  0xa0   :  { %v142_v27 = vadd.f32 %v139_v24, %v1608_v26 }
  0xa2   :  { %1351 = vtanh.f32 %v142_v27  ;;  %v1310_v31 = vmul.f32 -1.442695, %v142_v27 }
  0xa4   :  { %1353 = vpow2.f32 %v1310_v31 }
  0xa8   :  { %v1352_v28 = vpop.eup %1351 }
  0xa9   :  { %165 = vrot.lane.b32.xlu0 %v1352_v28, %s1483_s2 }
  0xaa   :  { %v1354_v32 = vpop.eup %1353 }
  0xab   :  { %v146_v33 = vadd.f32 1.0, %v1354_v32 }
  0xad   :  { %1355 = vrcp.f32 %v146_v33  ;;  %v158_v39 = vand.u32 2147483648, %v146_v33  ;;  %vm152_vm8 = vweird.f32 %v146_v33  ;;  %v156_v40 = vand.u32 2147483647, %v146_v33 }
  0xaf   :  { %v159_v42 = vor.u32 1.1754944e-38, %v158_v39  ;;  %vm157_vm10 = vcmp.eq.f32.partialorder %v156_v40, 8.507059e+37 }
  0xb3   :  { %v1356_v34 = vpop.eup %1355 }
  0xb4   :  { %v148_v35 = vmul.f32 %v1356_v34, %v146_v33  ;;  %vm153_vm7 = vweird.f32 %v1356_v34 }
  0xb5   :  { %vm154_vm9 = vmor %vm152_vm8, %vm153_vm7  ;;  %vm671_vm7 = vcmask 1041408  }
  0xb6   :  { %v149_v36 = vsub.f32 1.0, %v148_v35 }
  0xb8   :  { %v150_v37 = vmul.f32 %v1356_v34, %v149_v36 }
  0xba   :  { %v151_v38 = vadd.f32 %v1356_v34, %v150_v37 }
  0xbc   :  { %v155_v41 = vsel %vm154_vm9, %v1356_v34, %v151_v38 }
  0xbd   :  { %v160_v44 = vsel %vm157_vm10, %v159_v42, %v155_v41 }
  0xbe   :  { %v163_v45 = vmul.f32 %v160_v44, %v116_v43 }
 0x11b   :  { %v166_v29 = vpop.permute.xlu0 %165 }
 0x11c   :  { %v168_v30 = vmul.f32 %v166_v29, %v1608_v26 }
 0x11e   :  { %170 = vrot.lane.b32.xlu0 %v168_v30, %s1483_s2 }
 0x190   :  { %v171_v46 = vpop.permute.xlu0 %170 }
 0x191   :  { %v173_v47 = vadd.f32 %v171_v46, %v163_v45 }
 0x193   :  { %1357 = vtanh.f32 %v173_v47  ;;  %v230_v12 = vrot.slane %v173_v47, 7 }
 0x199   :  { %v1358_v48 = vpop.eup %1357 }
 0x19a   :  { %176 = vrot.lane.b32.xlu1 %v1358_v48, %s1483_s2 }
 0x20c   :  { %v177_v49 = vpop.permute.xlu1 %176 }
 0x20d   :  { %v1618_v50 = vmul.f32 %v177_v49, %v160_v44 }
 0x20f   :  { %181 = vrot.lane.b32.xlu1 %v1618_v50, %s1484_s20 }
 0x281   :  { %v182_v51 = vpop.permute.xlu1 %181 }
 0x282   :  { %1311 = vmatmul.msk.f32.vlgmr.msra.gmra.mxu3 %vm118_vm1, %v182_v51 }
 0x283   :  { %477 = vmatpush.msra.mxu3 %v1539_v2 }
 0x285   :  { %478 = vmatpush.msra.mxu3 %v1545_v3 }
 0x287   :  { %479 = vmatpush.msra.mxu3 %v1551_v4 }
 0x289   :  { %480 = vmatpush.msra.mxu3 %v1559_v5 }
 0x305   :  { %v202_v52 = vpop.f32.mrf.mxu3 }
 0x306   :  { %v206_v53 = vrot.slane %v202_v52, 7 }
 0x308   :  { %v208_v54 = vadd.f32 %v206_v53, %v1608_v26 }
 0x30a   :  { %1359 = vtanh.f32 %v208_v54  ;;  %v1312_v58 = vmul.f32 -1.442695, %v208_v54 }
 0x30c   :  { %1361 = vpow2.f32 %v1312_v58 }
 0x310   :  { %v1360_v55 = vpop.eup %1359 }
 0x311   :  { %234 = vrot.lane.b32.xlu2 %v1360_v55, %s1483_s2 }
 0x312   :  { %v1362_v59 = vpop.eup %1361 }
 0x313   :  { %v212_v60 = vadd.f32 1.0, %v1362_v59 }
 0x315   :  { %1363 = vrcp.f32 %v212_v60  ;;  %v224_v6 = vand.u32 2147483648, %v212_v60  ;;  %vm218_vm12 = vweird.f32 %v212_v60  ;;  %v222_v8 = vand.u32 2147483647, %v212_v60 }
 0x317   :  { %v225_v10 = vor.u32 1.1754944e-38, %v224_v6  ;;  %vm223_vm14 = vcmp.eq.f32.partialorder %v222_v8, 8.507059e+37 }
 0x31b   :  { %v1364_v61 = vpop.eup %1363 }
 0x31c   :  { %v214_v62 = vmul.f32 %v1364_v61, %v212_v60  ;;  %vm219_vm11 = vweird.f32 %v1364_v61 }
 0x31d   :  { %vm220_vm13 = vmor %vm218_vm12, %vm219_vm11  ;;  %vm673_vm12 = vcmask 1042432  }
 0x31e   :  { %v215_v63 = vsub.f32 1.0, %v214_v62 }
 0x320   :  { %v216_v0 = vmul.f32 %v1364_v61, %v215_v63 }
 0x322   :  { %v217_v1 = vadd.f32 %v1364_v61, %v216_v0 }
 0x324   :  { %v221_v9 = vsel %vm220_vm13, %v1364_v61, %v217_v1 }
 0x325   :  { %v226_v11 = vsel %vm223_vm14, %v225_v10, %v221_v9 }
 0x326   :  { %v232_v13 = vmul.f32 %v230_v12, %v226_v11 }
 0x36b   :  { %v235_v56 = vpop.permute.xlu2 %234 }
 0x36c   :  { %v237_v57 = vmul.f32 %v235_v56, %v1608_v26 }
 0x36e   :  { %239 = vrot.lane.b32.xlu2 %v237_v57, %s1483_s2 }
 0x3c8   :  { %v240_v14 = vpop.permute.xlu2 %239 }
 0x3c9   :  { %v242_v15 = vadd.f32 %v240_v14, %v232_v13 }
 0x3cb   :  { %1365 = vtanh.f32 %v242_v15  ;;  %v300_v42 = vrot.slane %v242_v15, 7 }
 0x3d1   :  { %v1366_v16 = vpop.eup %1365 }
 0x3d2   :  { %245 = vrot.lane.b32.xlu0 %v1366_v16, %s1483_s2 }
 0x444   :  { %v246_v18 = vpop.permute.xlu0 %245 }
 0x445   :  { %v248_v19 = vmul.f32 %v246_v18, %v226_v11 }
 0x447   :  { %v250_v20 = vrot.slane %v248_v19, 1  ;;  %v670_v49 = vsel %vm669_vm6, %v1618_v50, %v248_v19 }
 0x449   :  { %251 = vrot.lane.b32.xlu1 %v250_v20, %s1484_s20 }
 0x4bb   :  { %v252_v21 = vpop.permute.xlu1 %251 }
 0x4bc   :  { %1313 = vmatmul.msk.f32.vlgmr.msrb.gmra.mxu3 %vm118_vm1, %v252_v21 }
 0x4bd   :  { %774 = vmatpush.msrb.mxu3 %v1539_v2 }
 0x4bf   :  { %775 = vmatpush.msrb.mxu3 %v1545_v3 }
 0x4c1   :  { %776 = vmatpush.msrb.mxu3 %v1551_v4 }
 0x4c3   :  { %777 = vmatpush.msrb.mxu3 %v1559_v5 }
 0x53f   :  { %v272_v22 = vpop.f32.mrf.mxu3 }
 0x540   :  { %v276_v23 = vrot.slane %v272_v22, 6 }
 0x542   :  { %v278_v24 = vadd.f32 %v276_v23, %v1608_v26 }
 0x544   :  { %1367 = vtanh.f32 %v278_v24  ;;  %v1314_v29 = vmul.f32 -1.442695, %v278_v24 }
 0x546   :  { %1369 = vpow2.f32 %v1314_v29 }
 0x54a   :  { %v1368_v25 = vpop.eup %1367 }
 0x54b   :  { %304 = vrot.lane.b32.xlu2 %v1368_v25, %s1483_s2 }
 0x54c   :  { %v1370_v30 = vpop.eup %1369 }
 0x54d   :  { %v282_v31 = vadd.f32 1.0, %v1370_v30 }
 0x54f   :  { %1371 = vrcp.f32 %v282_v31  ;;  %v294_v37 = vand.u32 2147483648, %v282_v31  ;;  %vm288_vm2 = vweird.f32 %v282_v31  ;;  %v292_v38 = vand.u32 2147483647, %v282_v31 }
 0x551   :  { %v295_v40 = vor.u32 1.1754944e-38, %v294_v37  ;;  %vm293_vm5 = vcmp.eq.f32.partialorder %v292_v38, 8.507059e+37 }
 0x555   :  { %v1372_v32 = vpop.eup %1371 }
 0x556   :  { %v284_v33 = vmul.f32 %v1372_v32, %v282_v31  ;;  %vm289_vm15 = vweird.f32 %v1372_v32 }
 0x557   :  { %vm290_vm3 = vmor %vm288_vm2, %vm289_vm15 }
 0x558   :  { %v285_v34 = vsub.f32 1.0, %v284_v33 }
 0x55a   :  { %v286_v35 = vmul.f32 %v1372_v32, %v285_v34 }
 0x55c   :  { %v287_v36 = vadd.f32 %v1372_v32, %v286_v35 }
 0x55e   :  { %v291_v39 = vsel %vm290_vm3, %v1372_v32, %v287_v36  ;;  %vm675_vm3 = vcmask 1043456  }
 0x55f   :  { %v296_v41 = vsel %vm293_vm5, %v295_v40, %v291_v39 }
 0x560   :  { %v302_v43 = vmul.f32 %v300_v42, %v296_v41 }
 0x5a5   :  { %v305_v27 = vpop.permute.xlu2 %304 }
 0x5a6   :  { %v307_v28 = vmul.f32 %v305_v27, %v1608_v26 }
 0x5a8   :  { %309 = vrot.lane.b32.xlu0 %v307_v28, %s1483_s2 }
 0x61a   :  { %v310_v44 = vpop.permute.xlu0 %309 }
 0x61b   :  { %v312_v45 = vadd.f32 %v310_v44, %v302_v43 }
 0x61d   :  { %1373 = vtanh.f32 %v312_v45  ;;  %v370_v13 = vrot.slane %v312_v45, 7 }
 0x623   :  { %v1374_v46 = vpop.eup %1373 }
 0x624   :  { %315 = vrot.lane.b32.xlu1 %v1374_v46, %s1483_s2 }
 0x696   :  { %v316_v47 = vpop.permute.xlu1 %315 }
 0x697   :  { %v318_v48 = vmul.f32 %v316_v47, %v296_v41 }
 0x699   :  { %v320_v51 = vrot.slane %v318_v48, 2  ;;  %v672_v52 = vsel %vm671_vm7, %v670_v49, %v318_v48 }
 0x69b   :  { %321 = vrot.lane.b32.xlu2 %v320_v51, %s1484_s20 }
 0x6f5   :  { %v322_v53 = vpop.permute.xlu2 %321 }
 0x6f6   :  { %1315 = vmatmul.msk.f32.vlgmr.msrb.gmra.mxu1 %vm118_vm1, %v322_v53 }
 0x6f7   :  { %914 = vmatpush.msrb.mxu1 %v1539_v2 }
 0x6f9   :  { %915 = vmatpush.msrb.mxu1 %v1545_v3 }
 0x6fb   :  { %916 = vmatpush.msrb.mxu1 %v1551_v4 }
 0x6fd   :  { %917 = vmatpush.msrb.mxu1 %v1559_v5 }
 0x773   :  { %v342_v54 = vpop.f32.mrf.mxu1 }
 0x774   :  { %v346_v55 = vrot.slane %v342_v54, 5 }
 0x776   :  { %v348_v50 = vadd.f32 %v346_v55, %v1608_v26 }
 0x778   :  { %1375 = vtanh.f32 %v348_v50  ;;  %v1316_v59 = vmul.f32 -1.442695, %v348_v50 }
 0x77a   :  { %1377 = vpow2.f32 %v1316_v59 }
 0x77e   :  { %v1376_v56 = vpop.eup %1375 }
 0x77f   :  { %374 = vrot.lane.b32.xlu0 %v1376_v56, %s1483_s2 }
 0x780   :  { %v1378_v60 = vpop.eup %1377 }
 0x781   :  { %v352_v61 = vadd.f32 1.0, %v1378_v60 }
 0x783   :  { %1379 = vrcp.f32 %v352_v61  ;;  %v364_v8 = vand.u32 2147483648, %v352_v61  ;;  %vm358_vm9 = vweird.f32 %v352_v61  ;;  %v362_v9 = vand.u32 2147483647, %v352_v61 }
 0x785   :  { %v365_v11 = vor.u32 1.1754944e-38, %v364_v8  ;;  %vm363_vm11 = vcmp.eq.f32.partialorder %v362_v9, 8.507059e+37 }
 0x789   :  { %v1380_v62 = vpop.eup %1379 }
 0x78a   :  { %v354_v63 = vmul.f32 %v1380_v62, %v352_v61  ;;  %vm359_vm8 = vweird.f32 %v1380_v62 }
 0x78b   :  { %vm360_vm10 = vmor %vm358_vm9, %vm359_vm8 }
 0x78c   :  { %v355_v0 = vsub.f32 1.0, %v354_v63 }
 0x78e   :  { %v356_v1 = vmul.f32 %v1380_v62, %v355_v0 }
 0x790   :  { %v357_v6 = vadd.f32 %v1380_v62, %v356_v1 }
 0x792   :  { %v361_v10 = vsel %vm360_vm10, %v1380_v62, %v357_v6 }
 0x793   :  { %v366_v12 = vsel %vm363_vm11, %v365_v11, %v361_v10  ;;  %vm677_vm11 = vcmask 1044480  }
 0x794   :  { %v372_v14 = vmul.f32 %v370_v13, %v366_v12 }
 0x7f1   :  { %v375_v57 = vpop.permute.xlu0 %374 }
 0x7f2   :  { %v377_v58 = vmul.f32 %v375_v57, %v1608_v26 }
 0x7f4   :  { %379 = vrot.lane.b32.xlu1 %v377_v58, %s1483_s2 }
 0x866   :  { %v380_v15 = vpop.permute.xlu1 %379 }
 0x867   :  { %v382_v16 = vadd.f32 %v380_v15, %v372_v14 }
 0x869   :  { %1381 = vtanh.f32 %v382_v16  ;;  %v440_v44 = vrot.slane %v382_v16, 7 }
 0x86f   :  { %v1382_v18 = vpop.eup %1381 }
 0x870   :  { %385 = vrot.lane.b32.xlu2 %v1382_v18, %s1483_s2 }
 0x8ca   :  { %v386_v19 = vpop.permute.xlu2 %385 }
 0x8cb   :  { %v388_v20 = vmul.f32 %v386_v19, %v366_v12 }
 0x8cd   :  { %v390_v21 = vrot.slane %v388_v20, 3  ;;  %v674_v22 = vsel %vm673_vm12, %v672_v52, %v388_v20  ;;  %v30_v20 = vld [vmem:[%s1819_s0 + $0x8] sm:$0xff] }
 0x8ce   :  { %1306 = vmatmul.msk.f32.gmra.mxu0 %vm36_vm0, %v30_v20 }
 0x8cf   :  { %391 = vrot.lane.b32.xlu0 %v390_v21, %s1484_s20 }
 0x941   :  { %v392_v23 = vpop.permute.xlu0 %391 }
 0x942   :  { %1317 = vmatmul.msk.f32.vlgmr.msra.gmra.mxu2 %vm118_vm1, %v392_v23 }
 0x943   :  { %984 = vmatpush.msra.mxu2 %v1539_v2 }
 0x945   :  { %985 = vmatpush.msra.mxu2 %v1545_v3 }
 0x947   :  { %986 = vmatpush.msra.mxu2 %v1551_v4 }
 0x949   :  { %987 = vmatpush.msra.mxu2 %v1559_v5 }
 0x9c5   :  { %v412_v24 = vpop.f32.mrf.mxu2 }
 0x9c6   :  { %v416_v25 = vrot.slane %v412_v24, 4 }
 0x9c8   :  { %v418_v27 = vadd.f32 %v416_v25, %v1608_v26 }
 0x9ca   :  { %1383 = vtanh.f32 %v418_v27  ;;  %v1318_v31 = vmul.f32 -1.442695, %v418_v27  ;;  %v1692_v27 = vpop.f32.mrf.mxu0 }
 0x9cc   :  { %1385 = vpow2.f32 %v1318_v31 }
 0x9d0   :  { %v1384_v28 = vpop.eup %1383 }
 0x9d1   :  { %444 = vrot.lane.b32.xlu1 %v1384_v28, %s1483_s2 }
 0x9d2   :  { %v1386_v32 = vpop.eup %1385 }
 0x9d3   :  { %v422_v33 = vadd.f32 1.0, %v1386_v32 }
 0x9d5   :  { %1387 = vrcp.f32 %v422_v33  ;;  %v434_v39 = vand.u32 2147483648, %v422_v33  ;;  %vm428_vm14 = vweird.f32 %v422_v33  ;;  %v432_v40 = vand.u32 2147483647, %v422_v33 }
 0x9d7   :  { %v435_v42 = vor.u32 1.1754944e-38, %v434_v39  ;;  %vm433_vm2 = vcmp.eq.f32.partialorder %v432_v40, 8.507059e+37 }
 0x9db   :  { %v1388_v34 = vpop.eup %1387 }
 0x9dc   :  { %v424_v35 = vmul.f32 %v1388_v34, %v422_v33  ;;  %vm429_vm13 = vweird.f32 %v1388_v34 }
 0x9dd   :  { %vm430_vm15 = vmor %vm428_vm14, %vm429_vm13 }
 0x9de   :  { %v425_v36 = vsub.f32 1.0, %v424_v35 }
 0x9e0   :  { %v426_v37 = vmul.f32 %v1388_v34, %v425_v36 }
 0x9e2   :  { %v427_v38 = vadd.f32 %v1388_v34, %v426_v37 }
 0x9e4   :  { %v431_v41 = vsel %vm430_vm15, %v1388_v34, %v427_v38 }
 0x9e5   :  { %v436_v43 = vsel %vm433_vm2, %v435_v42, %v431_v41  ;;  %vm679_vm2 = vcmask 1045504  }
 0x9e6   :  { %v442_v45 = vmul.f32 %v440_v44, %v436_v43 }
 0xa43   :  { %v445_v29 = vpop.permute.xlu1 %444 }
 0xa44   :  { %v447_v30 = vmul.f32 %v445_v29, %v1608_v26 }
 0xa46   :  { %449 = vrot.lane.b32.xlu2 %v447_v30, %s1483_s2 }
 0xaa0   :  { %v450_v46 = vpop.permute.xlu2 %449 }
 0xaa1   :  { %v452_v47 = vadd.f32 %v450_v46, %v442_v45 }
 0xaa3   :  { %1389 = vtanh.f32 %v452_v47  ;;  %v510_v14 = vrot.slane %v452_v47, 7 }
 0xaa9   :  { %v1390_v48 = vpop.eup %1389 }
 0xaaa   :  { %455 = vrot.lane.b32.xlu0 %v1390_v48, %s1483_s2 }
 0xb1c   :  { %v456_v49 = vpop.permute.xlu0 %455 }
 0xb1d   :  { %v458_v51 = vmul.f32 %v456_v49, %v436_v43 }
 0xb1f   :  { %v460_v52 = vrot.slane %v458_v51, 4  ;;  %v676_v53 = vsel %vm675_vm3, %v674_v22, %v458_v51 }
 0xb21   :  { %461 = vrot.lane.b32.xlu1 %v460_v52, %s1484_s20 }
 0xb93   :  { %v462_v54 = vpop.permute.xlu1 %461 }
 0xb94   :  { %1319 = vmatmul.msk.f32.vlgmr.msra.gmra.mxu3 %vm118_vm1, %v462_v54 }
 0xb95   :  { %1054 = vmatpush.msra.mxu3 %v1539_v2 }
 0xb97   :  { %1055 = vmatpush.msra.mxu3 %v1545_v3 }
 0xb99   :  { %1056 = vmatpush.msra.mxu3 %v1551_v4 }
 0xb9b   :  { %1057 = vmatpush.msra.mxu3 %v1559_v5 }
 0xc17   :  { %v482_v55 = vpop.f32.mrf.mxu3 }
 0xc18   :  { %v486_v50 = vrot.slane %v482_v55, 3 }
 0xc1a   :  { %v488_v56 = vadd.f32 %v486_v50, %v1608_v26 }
 0xc1c   :  { %1391 = vtanh.f32 %v488_v56  ;;  %v1320_v60 = vmul.f32 -1.442695, %v488_v56 }
 0xc1e   :  { %1393 = vpow2.f32 %v1320_v60 }
 0xc22   :  { %v1392_v57 = vpop.eup %1391 }
 0xc23   :  { %514 = vrot.lane.b32.xlu2 %v1392_v57, %s1483_s2 }
 0xc24   :  { %v1394_v61 = vpop.eup %1393 }
 0xc25   :  { %v492_v62 = vadd.f32 1.0, %v1394_v61 }
 0xc27   :  { %1395 = vrcp.f32 %v492_v62  ;;  %v504_v9 = vand.u32 2147483648, %v492_v62  ;;  %vm498_vm8 = vweird.f32 %v492_v62  ;;  %v502_v10 = vand.u32 2147483647, %v492_v62 }
 0xc29   :  { %v505_v12 = vor.u32 1.1754944e-38, %v504_v9  ;;  %vm503_vm10 = vcmp.eq.f32.partialorder %v502_v10, 8.507059e+37 }
 0xc2d   :  { %v1396_v63 = vpop.eup %1395 }
 0xc2e   :  { %v494_v0 = vmul.f32 %v1396_v63, %v492_v62  ;;  %vm499_vm5 = vweird.f32 %v1396_v63 }
 0xc2f   :  { %vm500_vm9 = vmor %vm498_vm8, %vm499_vm5 }
 0xc30   :  { %v495_v1 = vsub.f32 1.0, %v494_v0 }
 0xc32   :  { %v496_v6 = vmul.f32 %v1396_v63, %v495_v1 }
 0xc34   :  { %v497_v8 = vadd.f32 %v1396_v63, %v496_v6 }
 0xc36   :  { %v501_v11 = vsel %vm500_vm9, %v1396_v63, %v497_v8 }
 0xc37   :  { %v506_v13 = vsel %vm503_vm10, %v505_v12, %v501_v11 }
 0xc38   :  { %v512_v15 = vmul.f32 %v510_v14, %v506_v13 }
 0xc7d   :  { %v515_v58 = vpop.permute.xlu2 %514 }
 0xc7e   :  { %v517_v59 = vmul.f32 %v515_v58, %v1608_v26 }
 0xc80   :  { %519 = vrot.lane.b32.xlu0 %v517_v59, %s1483_s2 }
 0xcf2   :  { %v520_v16 = vpop.permute.xlu0 %519 }
 0xcf3   :  { %v522_v18 = vadd.f32 %v520_v16, %v512_v15 }
 0xcf5   :  { %1397 = vtanh.f32 %v522_v18  ;;  %v580_v47 = vrot.slane %v522_v18, 7 }
 0xcfb   :  { %v1398_v19 = vpop.eup %1397 }
 0xcfc   :  { %525 = vrot.lane.b32.xlu1 %v1398_v19, %s1483_s2 }
 0xd6e   :  { %v526_v21 = vpop.permute.xlu1 %525 }
 0xd6f   :  { %v528_v22 = vmul.f32 %v526_v21, %v506_v13 }
 0xd71   :  { %v530_v23 = vrot.slane %v528_v22, 5  ;;  %v678_v24 = vsel %vm677_vm11, %v676_v53, %v528_v22 }
 0xd73   :  { %531 = vrot.lane.b32.xlu2 %v530_v23, %s1484_s20  ;;  %v64_v23 = vadd.f32 %v1600_v7, %v1692_v27 }
 0xdcd   :  { %v532_v25 = vpop.permute.xlu2 %531 }
 0xdce   :  { %1321 = vmatmul.msk.f32.vlgmr.msrb.gmra.mxu0 %vm118_vm1, %v532_v25 }
 0xdcf   :  { %1124 = vmatpush.msrb.mxu0 %v1539_v2 }
 0xdd1   :  { %1125 = vmatpush.msrb.mxu0 %v1545_v3 }
 0xdd3   :  { %1126 = vmatpush.msrb.mxu0 %v1551_v4 }
 0xdd5   :  { %1127 = vmatpush.msrb.mxu0 %v1559_v5 }
 0xe4b   :  { %v552_v28 = vpop.f32.mrf.mxu0 }
 0xe4c   :  { %v556_v29 = vrot.slane %v552_v28, 2 }
 0xe4e   :  { %v558_v30 = vadd.f32 %v556_v29, %v1608_v26 }
 0xe50   :  { %1399 = vtanh.f32 %v558_v30  ;;  %v1322_v34 = vmul.f32 -1.442695, %v558_v30 }
 0xe52   :  { %1401 = vpow2.f32 %v1322_v34 }
 0xe56   :  { %v1400_v31 = vpop.eup %1399 }
 0xe57   :  { %584 = vrot.lane.b32.xlu0 %v1400_v31, %s1483_s2 }
 0xe58   :  { %v1402_v35 = vpop.eup %1401 }
 0xe59   :  { %v562_v36 = vadd.f32 1.0, %v1402_v35 }
 0xe5b   :  { %1403 = vrcp.f32 %v562_v36  ;;  %v574_v42 = vand.u32 2147483648, %v562_v36  ;;  %vm568_vm13 = vweird.f32 %v562_v36  ;;  %v572_v43 = vand.u32 2147483647, %v562_v36 }
 0xe5d   :  { %v575_v45 = vor.u32 1.1754944e-38, %v574_v42  ;;  %vm573_vm15 = vcmp.eq.f32.partialorder %v572_v43, 8.507059e+37 }
 0xe61   :  { %v1404_v37 = vpop.eup %1403 }
 0xe62   :  { %v564_v38 = vmul.f32 %v1404_v37, %v562_v36  ;;  %vm569_vm0 = vweird.f32 %v1404_v37 }
 0xe63   :  { %vm570_vm14 = vmor %vm568_vm13, %vm569_vm0  ;;  %vm681_vm0 = vcmask 1046528  }
 0xe64   :  { %v565_v39 = vsub.f32 1.0, %v564_v38 }
 0xe66   :  { %v566_v40 = vmul.f32 %v1404_v37, %v565_v39 }
 0xe68   :  { %v567_v41 = vadd.f32 %v1404_v37, %v566_v40 }
 0xe6a   :  { %v571_v44 = vsel %vm570_vm14, %v1404_v37, %v567_v41 }
 0xe6b   :  { %v576_v46 = vsel %vm573_vm15, %v575_v45, %v571_v44 }
 0xe6c   :  { %v582_v48 = vmul.f32 %v580_v47, %v576_v46 }
 0xec9   :  { %v585_v32 = vpop.permute.xlu0 %584 }
 0xeca   :  { %v587_v33 = vmul.f32 %v585_v32, %v1608_v26 }
 0xecc   :  { %589 = vrot.lane.b32.xlu1 %v587_v33, %s1483_s2 }
 0xf3e   :  { %v590_v49 = vpop.permute.xlu1 %589 }
 0xf3f   :  { %v592_v51 = vadd.f32 %v590_v49, %v582_v48 }
 0xf41   :  { %1405 = vtanh.f32 %v592_v51  ;;  %v650_v12 = vrot.slane %v592_v51, 7 }
 0xf47   :  { %v1406_v52 = vpop.eup %1405 }
 0xf48   :  { %595 = vrot.lane.b32.xlu2 %v1406_v52, %s1483_s2 }
 0xfa2   :  { %v596_v53 = vpop.permute.xlu2 %595 }
 0xfa3   :  { %v598_v54 = vmul.f32 %v596_v53, %v576_v46 }
 0xfa5   :  { %v600_v55 = vrot.slane %v598_v54, 6  ;;  %v680_v50 = vsel %vm679_vm2, %v678_v24, %v598_v54  ;;  %v1308_v24 = vmul.f32 -1.442695, %v64_v23 }
 0xfa7   :  { %601 = vrot.lane.b32.xlu0 %v600_v55, %s1484_s20 }
0x1019   :  { %v602_v56 = vpop.permute.xlu0 %601 }
0x101a   :  { %1323 = vmatmul.msk.f32.vlgmr.msra.gmra.mxu1 %vm118_vm1, %v602_v56 }
0x101b   :  { %1194 = vmatpush.msra.mxu1 %v1539_v2 }
0x101d   :  { %1195 = vmatpush.msra.mxu1 %v1545_v3 }
0x101f   :  { %1196 = vmatpush.msra.mxu1 %v1551_v4 }
0x1021   :  { %1197 = vmatpush.msra.mxu1 %v1559_v5 }
0x1097   :  { %v622_v57 = vpop.f32.mrf.mxu1 }
0x1098   :  { %v626_v58 = vrot.slane %v622_v57, 1 }
0x109a   :  { %v628_v59 = vadd.f32 %v626_v58, %v1608_v26 }
0x109c   :  { %1407 = vtanh.f32 %v628_v59  ;;  %v1324_v2 = vmul.f32 -1.442695, %v628_v59 }
0x109e   :  { %1409 = vpow2.f32 %v1324_v2 }
0x10a2   :  { %v1408_v60 = vpop.eup %1407 }
0x10a3   :  { %654 = vrot.lane.b32.xlu1 %v1408_v60, %s1483_s2 }
0x10a4   :  { %v1410_v3 = vpop.eup %1409 }
0x10a5   :  { %v632_v63 = vadd.f32 1.0, %v1410_v3 }
0x10a7   :  { %1411 = vrcp.f32 %v632_v63  ;;  %v644_v8 = vand.u32 2147483648, %v632_v63  ;;  %vm638_vm8 = vweird.f32 %v632_v63  ;;  %v642_v9 = vand.u32 2147483647, %v632_v63 }
0x10a9   :  { %v645_v11 = vor.u32 1.1754944e-38, %v644_v8  ;;  %vm643_vm10 = vcmp.eq.f32.partialorder %v642_v9, 8.507059e+37 }
0x10ad   :  { %v1412_v4 = vpop.eup %1411 }
0x10ae   :  { %v634_v5 = vmul.f32 %v1412_v4, %v632_v63  ;;  %vm639_vm5 = vweird.f32 %v1412_v4 }
0x10af   :  { %vm640_vm9 = vmor %vm638_vm8, %vm639_vm5 }
0x10b0   :  { %v635_v0 = vsub.f32 1.0, %v634_v5 }
0x10b2   :  { %v636_v1 = vmul.f32 %v1412_v4, %v635_v0 }
0x10b4   :  { %v637_v6 = vadd.f32 %v1412_v4, %v636_v1 }
0x10b6   :  { %v641_v10 = vsel %vm640_vm9, %v1412_v4, %v637_v6 }
0x1115   :  { %v655_v61 = vpop.permute.xlu1 %654 }
0x1116   :  { %v657_v62 = vmul.f32 %v655_v61, %v1608_v26  ;;  %v646_v26 = vsel %vm643_vm10, %v645_v11, %v641_v10 }
0x1117   :  { %v652_v13 = vmul.f32 %v650_v12, %v646_v26 }
0x1118   :  { %659 = vrot.lane.b32.xlu2 %v657_v62, %s1483_s2 }
0x1172   :  { %v660_v14 = vpop.permute.xlu2 %659 }
0x1173   :  { %v662_v15 = vadd.f32 %v660_v14, %v652_v13 }
0x1175   :  { %1413 = vtanh.f32 %v662_v15 }
0x1176   :  { %1415 = vpow2.f32 %v1308_v24 }
0x117b   :  { %v1414_v16 = vpop.eup %1413 }
0x117c   :  { %665 = vrot.lane.b32.xlu0 %v1414_v16, %s1483_s2  ;;  %v1416_v25 = vpop.eup %1415 }
0x117d   :  { %v76_v28 = vadd.f32 1.0, %v1416_v25 }
0x117f   :  { %1417 = vrcp.f32 %v76_v28  ;;  %vm97_vm13 = vweird.f32 %v76_v28  ;;  %v103_v33 = vand.u32 2147483648, %v76_v28  ;;  %v101_v35 = vand.u32 2147483647, %v76_v28 }
0x1181   :  { %v104_v36 = vor.u32 1.1754944e-38, %v103_v33  ;;  %vm102_vm5 = vcmp.eq.f32.partialorder %v101_v35, 8.507059e+37 }
0x1185   :  { %v1418_v29 = vpop.eup %1417 }
0x1186   :  { %v93_v30 = vmul.f32 %v1418_v29, %v76_v28  ;;  %vm98_vm14 = vweird.f32 %v1418_v29 }
0x1187   :  { %vm99_vm15 = vmor %vm97_vm13, %vm98_vm14 }
0x1188   :  { %v94_v31 = vsub.f32 1.0, %v93_v30 }
0x118a   :  { %v95_v32 = vmul.f32 %v1418_v29, %v94_v31 }
0x118c   :  { %v96_v34 = vadd.f32 %v1418_v29, %v95_v32 }
0x118e   :  { %v100_v37 = vsel %vm99_vm15, %v1418_v29, %v96_v34 }
0x118f   :  { %v105_v38 = vsel %vm102_vm5, %v104_v36, %v100_v37 }
0x1190   :  { %v1720_v7 = vsel %vm68_vm4, %v105_v38, %v64_v23 }
0x11ee   :  { %v666_v18 = vpop.permute.xlu0 %665 }
0x11ef   :  { %v668_v19 = vmul.f32 %v666_v18, %v646_v26 }
0x11f1   :  { %v691_v20 = vrot.slane %v668_v19, 7  ;;  %v1712_v21 = vsel %vm681_vm0, %v680_v50, %v668_v19  ;;  %v738_v50 = vrot.slane %v662_v15, 7 }
0x11f3   :  { %692 = vrot.lane.b32.xlu1 %v691_v20, %s1484_s20 }
0x1265   :  { %v693_v22 = vpop.permute.xlu1 %692 }
0x1266   :  { %1325 = vmatmul.msk.f32.vlgmr.msrb.gmra.mxu2 %vm118_vm1, %v693_v22 }
0x12e9   :  { %v713_v27 = vpop.f32.mrf.mxu2 }
0x12ea   :  { %v716_v39 = vadd.f32 %v713_v27, %v1720_v7 }
0x12ec   :  { %1419 = vtanh.f32 %v716_v39  ;;  %v1326_v43 = vmul.f32 -1.442695, %v716_v39 }
0x12ee   :  { %1421 = vpow2.f32 %v1326_v43 }
0x12f2   :  { %v1420_v40 = vpop.eup %1419 }
0x12f3   :  { %742 = vrot.lane.b32.xlu2 %v1420_v40, %s1483_s2 }
0x12f4   :  { %v1422_v44 = vpop.eup %1421 }
0x12f5   :  { %v720_v45 = vadd.f32 1.0, %v1422_v44 }
0x12f7   :  { %1423 = vrcp.f32 %v720_v45  ;;  %v732_v51 = vand.u32 2147483648, %v720_v45  ;;  %vm726_vm8 = vweird.f32 %v720_v45  ;;  %v730_v52 = vand.u32 2147483647, %v720_v45 }
0x12f9   :  { %v733_v54 = vor.u32 1.1754944e-38, %v732_v51  ;;  %vm731_vm10 = vcmp.eq.f32.partialorder %v730_v52, 8.507059e+37 }
0x12fd   :  { %v1424_v17 = vpop.eup %1423 }
0x12fe   :  { %v722_v46 = vmul.f32 %v1424_v17, %v720_v45  ;;  %vm727_vm4 = vweird.f32 %v1424_v17 }
0x12ff   :  { %vm728_vm9 = vmor %vm726_vm8, %vm727_vm4 }
0x1300   :  { %v723_v47 = vsub.f32 1.0, %v722_v46 }
0x1302   :  { %v724_v48 = vmul.f32 %v1424_v17, %v723_v47 }
0x1304   :  { %v725_v49 = vadd.f32 %v1424_v17, %v724_v48 }
0x1306   :  { %v729_v53 = vsel %vm728_vm9, %v1424_v17, %v725_v49 }
0x1307   :  { %v734_v55 = vsel %vm731_vm10, %v733_v54, %v729_v53 }
0x1308   :  { %v740_v56 = vmul.f32 %v738_v50, %v734_v55 }
0x134d   :  { %v743_v41 = vpop.permute.xlu2 %742 }
0x134e   :  { %v745_v42 = vmul.f32 %v743_v41, %v1720_v7 }
0x1350   :  { %747 = vrot.lane.b32.xlu0 %v745_v42, %s1483_s2 }
0x13c2   :  { %v748_v57 = vpop.permute.xlu0 %747 }
0x13c3   :  { %v750_v58 = vadd.f32 %v748_v57, %v740_v56 }
0x13c5   :  { %1425 = vtanh.f32 %v750_v58  ;;  %v807_v19 = vrot.slane %v750_v58, 7 }
0x13cb   :  { %v1426_v59 = vpop.eup %1425 }
0x13cc   :  { %753 = vrot.lane.b32.xlu1 %v1426_v59, %s1483_s2 }
0x143e   :  { %v754_v60 = vpop.permute.xlu1 %753 }
0x143f   :  { %v1727_v61 = vmul.f32 %v754_v60, %v734_v55 }
0x1441   :  { %758 = vrot.lane.b32.xlu2 %v1727_v61, %s1484_s20 }
0x149b   :  { %v759_v62 = vpop.permute.xlu2 %758 }
0x149c   :  { %1327 = vmatmul.msk.f32.vlgmr.msrb.gmra.mxu3 %vm118_vm1, %v759_v62 }
0x151f   :  { %v779_v2 = vpop.f32.mrf.mxu3 }
0x1520   :  { %v783_v3 = vrot.slane %v779_v2, 7 }
0x1522   :  { %v785_v63 = vadd.f32 %v783_v3, %v1720_v7 }
0x1524   :  { %1427 = vtanh.f32 %v785_v63  ;;  %v1328_v1 = vmul.f32 -1.442695, %v785_v63 }
0x1526   :  { %1429 = vpow2.f32 %v1328_v1 }
0x152a   :  { %v1428_v4 = vpop.eup %1427 }
0x152b   :  { %811 = vrot.lane.b32.xlu0 %v1428_v4, %s1483_s2 }
0x152c   :  { %v1430_v6 = vpop.eup %1429 }
0x152d   :  { %v789_v8 = vadd.f32 1.0, %v1430_v6 }
0x152f   :  { %1431 = vrcp.f32 %v789_v8  ;;  %v801_v13 = vand.u32 2147483648, %v789_v8  ;;  %vm795_vm14 = vweird.f32 %v789_v8  ;;  %v799_v14 = vand.u32 2147483647, %v789_v8 }
0x1531   :  { %v802_v16 = vor.u32 1.1754944e-38, %v801_v13  ;;  %vm800_vm5 = vcmp.eq.f32.partialorder %v799_v14, 8.507059e+37 }
0x1535   :  { %v1432_v9 = vpop.eup %1431 }
0x1536   :  { %v791_v10 = vmul.f32 %v1432_v9, %v789_v8  ;;  %vm796_vm13 = vweird.f32 %v1432_v9 }
0x1537   :  { %vm797_vm15 = vmor %vm795_vm14, %vm796_vm13 }
0x1538   :  { %v792_v11 = vsub.f32 1.0, %v791_v10 }
0x153a   :  { %v793_v26 = vmul.f32 %v1432_v9, %v792_v11 }
0x153c   :  { %v794_v12 = vadd.f32 %v1432_v9, %v793_v26 }
0x153e   :  { %v798_v15 = vsel %vm797_vm15, %v1432_v9, %v794_v12 }
0x153f   :  { %v803_v18 = vsel %vm800_vm5, %v802_v16, %v798_v15 }
0x1540   :  { %v809_v20 = vmul.f32 %v807_v19, %v803_v18 }
0x159d   :  { %v812_v5 = vpop.permute.xlu0 %811 }
0x159e   :  { %v814_v0 = vmul.f32 %v812_v5, %v1720_v7 }
0x15a0   :  { %816 = vrot.lane.b32.xlu1 %v814_v0, %s1483_s2 }
0x1612   :  { %v817_v22 = vpop.permute.xlu1 %816 }
0x1613   :  { %v819_v23 = vadd.f32 %v817_v22, %v809_v20 }
0x1615   :  { %1433 = vtanh.f32 %v819_v23  ;;  %v877_v48 = vrot.slane %v819_v23, 7 }
0x161b   :  { %v1434_v24 = vpop.eup %1433 }
0x161c   :  { %822 = vrot.lane.b32.xlu2 %v1434_v24, %s1483_s2 }
0x1676   :  { %v823_v25 = vpop.permute.xlu2 %822 }
0x1677   :  { %v825_v28 = vmul.f32 %v823_v25, %v803_v18 }
0x1679   :  { %v827_v29 = vrot.slane %v825_v28, 1  ;;  %v1246_v50 = vsel %vm669_vm6, %v1727_v61, %v825_v28 }
0x167b   :  { %828 = vrot.lane.b32.xlu0 %v827_v29, %s1484_s20 }
0x16ed   :  { %v829_v30 = vpop.permute.xlu0 %828 }
0x16ee   :  { %1329 = vmatmul.msk.f32.vlgmr.msra.gmra.mxu0 %vm118_vm1, %v829_v30 }
0x176b   :  { %v849_v31 = vpop.f32.mrf.mxu0 }
0x176c   :  { %v853_v32 = vrot.slane %v849_v31, 6 }
0x176e   :  { %v855_v33 = vadd.f32 %v853_v32, %v1720_v7 }
0x1770   :  { %1435 = vtanh.f32 %v855_v33  ;;  %v1330_v37 = vmul.f32 -1.442695, %v855_v33 }
0x1772   :  { %1437 = vpow2.f32 %v1330_v37 }
0x1776   :  { %v1436_v34 = vpop.eup %1435 }
0x1777   :  { %881 = vrot.lane.b32.xlu1 %v1436_v34, %s1483_s2 }
0x1778   :  { %v1438_v38 = vpop.eup %1437 }
0x1779   :  { %v859_v27 = vadd.f32 1.0, %v1438_v38 }
0x177b   :  { %1439 = vrcp.f32 %v859_v27  ;;  %v871_v44 = vand.u32 2147483648, %v859_v27  ;;  %vm865_vm8 = vweird.f32 %v859_v27  ;;  %v869_v45 = vand.u32 2147483647, %v859_v27 }
0x177d   :  { %v872_v46 = vor.u32 1.1754944e-38, %v871_v44  ;;  %vm870_vm10 = vcmp.eq.f32.partialorder %v869_v45, 8.507059e+37 }
0x1781   :  { %v1440_v39 = vpop.eup %1439 }
0x1782   :  { %v861_v40 = vmul.f32 %v1440_v39, %v859_v27  ;;  %vm866_vm4 = vweird.f32 %v1440_v39 }
0x1783   :  { %vm867_vm9 = vmor %vm865_vm8, %vm866_vm4 }
0x1784   :  { %v862_v41 = vsub.f32 1.0, %v861_v40 }
0x1786   :  { %v863_v42 = vmul.f32 %v1440_v39, %v862_v41 }
0x1788   :  { %v864_v43 = vadd.f32 %v1440_v39, %v863_v42 }
0x178a   :  { %v868_v17 = vsel %vm867_vm9, %v1440_v39, %v864_v43 }
0x178b   :  { %v873_v47 = vsel %vm870_vm10, %v872_v46, %v868_v17 }
0x178c   :  { %v879_v49 = vmul.f32 %v877_v48, %v873_v47 }
0x17e9   :  { %v882_v35 = vpop.permute.xlu1 %881 }
0x17ea   :  { %v884_v36 = vmul.f32 %v882_v35, %v1720_v7 }
0x17ec   :  { %886 = vrot.lane.b32.xlu2 %v884_v36, %s1483_s2 }
0x1846   :  { %v887_v51 = vpop.permute.xlu2 %886 }
0x1847   :  { %v889_v52 = vadd.f32 %v887_v51, %v879_v49 }
0x1849   :  { %1441 = vtanh.f32 %v889_v52  ;;  %v947_v14 = vrot.slane %v889_v52, 7 }
0x184f   :  { %v1442_v53 = vpop.eup %1441 }
0x1850   :  { %892 = vrot.lane.b32.xlu0 %v1442_v53, %s1483_s2 }
0x18c2   :  { %v893_v54 = vpop.permute.xlu0 %892 }
0x18c3   :  { %v895_v55 = vmul.f32 %v893_v54, %v873_v47 }
0x18c5   :  { %v897_v56 = vrot.slane %v895_v55, 2  ;;  %v1247_v57 = vsel %vm671_vm7, %v1246_v50, %v895_v55 }
0x18c7   :  { %898 = vrot.lane.b32.xlu1 %v897_v56, %s1484_s20 }
0x1939   :  { %v899_v58 = vpop.permute.xlu1 %898 }
0x193a   :  { %1331 = vmatmul.msk.f32.vlgmr.msrb.gmra.mxu1 %vm118_vm1, %v899_v58 }
0x19b7   :  { %v919_v59 = vpop.f32.mrf.mxu1 }
0x19b8   :  { %v923_v60 = vrot.slane %v919_v59, 5 }
0x19ba   :  { %v925_v62 = vadd.f32 %v923_v60, %v1720_v7 }
0x19bc   :  { %1443 = vtanh.f32 %v925_v62  ;;  %v1332_v61 = vmul.f32 -1.442695, %v925_v62 }
0x19be   :  { %1445 = vpow2.f32 %v1332_v61 }
0x19c2   :  { %v1444_v2 = vpop.eup %1443 }
0x19c3   :  { %951 = vrot.lane.b32.xlu2 %v1444_v2, %s1483_s2 }
0x19c4   :  { %v1446_v4 = vpop.eup %1445 }
0x19c5   :  { %v929_v5 = vadd.f32 1.0, %v1446_v4 }
0x19c7   :  { %1447 = vrcp.f32 %v929_v5  ;;  %v941_v10 = vand.u32 2147483648, %v929_v5  ;;  %vm935_vm7 = vweird.f32 %v929_v5  ;;  %v939_v11 = vand.u32 2147483647, %v929_v5 }
0x19c9   :  { %v942_v12 = vor.u32 1.1754944e-38, %v941_v10  ;;  %vm940_vm14 = vcmp.eq.f32.partialorder %v939_v11, 8.507059e+37 }
0x19cd   :  { %v1448_v0 = vpop.eup %1447 }
0x19ce   :  { %v931_v1 = vmul.f32 %v1448_v0, %v929_v5  ;;  %vm936_vm6 = vweird.f32 %v1448_v0 }
0x19cf   :  { %vm937_vm13 = vmor %vm935_vm7, %vm936_vm6 }
0x19d0   :  { %v932_v6 = vsub.f32 1.0, %v931_v1 }
0x19d2   :  { %v933_v8 = vmul.f32 %v1448_v0, %v932_v6 }
0x19d4   :  { %v934_v9 = vadd.f32 %v1448_v0, %v933_v8 }
0x19d6   :  { %v938_v26 = vsel %vm937_vm13, %v1448_v0, %v934_v9 }
0x19d7   :  { %v943_v13 = vsel %vm940_vm14, %v942_v12, %v938_v26 }
0x19d8   :  { %v949_v15 = vmul.f32 %v947_v14, %v943_v13 }
0x1a1d   :  { %v952_v3 = vpop.permute.xlu2 %951 }
0x1a1e   :  { %v954_v63 = vmul.f32 %v952_v3, %v1720_v7 }
0x1a20   :  { %956 = vrot.lane.b32.xlu0 %v954_v63, %s1483_s2 }
0x1a92   :  { %v957_v16 = vpop.permute.xlu0 %956 }
0x1a93   :  { %v959_v18 = vadd.f32 %v957_v16, %v949_v15 }
0x1a95   :  { %1449 = vtanh.f32 %v959_v18  ;;  %v1017_v17 = vrot.slane %v959_v18, 7 }
0x1a9b   :  { %v1450_v19 = vpop.eup %1449 }
0x1a9c   :  { %962 = vrot.lane.b32.xlu1 %v1450_v19, %s1483_s2 }
0x1b0e   :  { %v963_v20 = vpop.permute.xlu1 %962 }
0x1b0f   :  { %v965_v22 = vmul.f32 %v963_v20, %v943_v13 }
0x1b11   :  { %v967_v23 = vrot.slane %v965_v22, 3  ;;  %v1248_v24 = vsel %vm673_vm12, %v1247_v57, %v965_v22 }
0x1b13   :  { %968 = vrot.lane.b32.xlu2 %v967_v23, %s1484_s20 }
0x1b6d   :  { %v969_v25 = vpop.permute.xlu2 %968 }
0x1b6e   :  { %1333 = vmatmul.msk.f32.vlgmr.msra.gmra.mxu2 %vm118_vm1, %v969_v25 }
0x1bf1   :  { %v989_v28 = vpop.f32.mrf.mxu2 }
0x1bf2   :  { %v993_v29 = vrot.slane %v989_v28, 4 }
0x1bf4   :  { %v995_v30 = vadd.f32 %v993_v29, %v1720_v7 }
0x1bf6   :  { %1451 = vtanh.f32 %v995_v30  ;;  %v1334_v34 = vmul.f32 -1.442695, %v995_v30 }
0x1bf8   :  { %1453 = vpow2.f32 %v1334_v34 }
0x1bfc   :  { %v1452_v31 = vpop.eup %1451 }
0x1bfd   :  { %1021 = vrot.lane.b32.xlu0 %v1452_v31, %s1483_s2 }
0x1bfe   :  { %v1454_v35 = vpop.eup %1453 }
0x1bff   :  { %v999_v36 = vadd.f32 1.0, %v1454_v35 }
0x1c01   :  { %1455 = vrcp.f32 %v999_v36  ;;  %v1011_v41 = vand.u32 2147483648, %v999_v36  ;;  %vm1005_vm15 = vweird.f32 %v999_v36  ;;  %v1009_v42 = vand.u32 2147483647, %v999_v36 }
0x1c03   :  { %v1012_v44 = vor.u32 1.1754944e-38, %v1011_v41  ;;  %vm1010_vm4 = vcmp.eq.f32.partialorder %v1009_v42, 8.507059e+37 }
0x1c07   :  { %v1456_v37 = vpop.eup %1455 }
0x1c08   :  { %v1001_v38 = vmul.f32 %v1456_v37, %v999_v36  ;;  %vm1006_vm12 = vweird.f32 %v1456_v37 }
0x1c09   :  { %vm1007_vm5 = vmor %vm1005_vm15, %vm1006_vm12 }
0x1c0a   :  { %v1002_v27 = vsub.f32 1.0, %v1001_v38 }
0x1c0c   :  { %v1003_v39 = vmul.f32 %v1456_v37, %v1002_v27 }
0x1c0e   :  { %v1004_v40 = vadd.f32 %v1456_v37, %v1003_v39 }
0x1c10   :  { %v1008_v43 = vsel %vm1007_vm5, %v1456_v37, %v1004_v40  ;;  %vm1298_vm5 = vcmask 15360  }
0x1c11   :  { %v1013_v45 = vsel %vm1010_vm4, %v1012_v44, %v1008_v43 }
0x1c12   :  { %v1019_v46 = vmul.f32 %v1017_v17, %v1013_v45 }
0x1c6f   :  { %v1022_v32 = vpop.permute.xlu0 %1021 }
0x1c70   :  { %v1024_v33 = vmul.f32 %v1022_v32, %v1720_v7 }
0x1c72   :  { %1026 = vrot.lane.b32.xlu1 %v1024_v33, %s1483_s2 }
0x1ce4   :  { %v1027_v47 = vpop.permute.xlu1 %1026 }
0x1ce5   :  { %v1029_v48 = vadd.f32 %v1027_v47, %v1019_v46 }
0x1ce7   :  { %1457 = vtanh.f32 %v1029_v48  ;;  %v1087_v11 = vrot.slane %v1029_v48, 7 }
0x1ced   :  { %v1458_v49 = vpop.eup %1457 }
0x1cee   :  { %1032 = vrot.lane.b32.xlu2 %v1458_v49, %s1483_s2 }
0x1d48   :  { %v1033_v51 = vpop.permute.xlu2 %1032 }
0x1d49   :  { %v1035_v52 = vmul.f32 %v1033_v51, %v1013_v45 }
0x1d4b   :  { %v1037_v53 = vrot.slane %v1035_v52, 4  ;;  %v1249_v54 = vsel %vm675_vm3, %v1248_v24, %v1035_v52 }
0x1d4d   :  { %1038 = vrot.lane.b32.xlu0 %v1037_v53, %s1484_s20 }
0x1dbf   :  { %v1039_v55 = vpop.permute.xlu0 %1038 }
0x1dc0   :  { %1335 = vmatmul.msk.f32.vlgmr.msra.gmra.mxu3 %vm118_vm1, %v1039_v55 }
0x1e43   :  { %v1059_v50 = vpop.f32.mrf.mxu3 }
0x1e44   :  { %v1063_v56 = vrot.slane %v1059_v50, 3  ;;  %v1264_v50 = vld [vmem:[%s1824_s4 + $0x18] sm:$0xff] }
0x1e45   :  { %1287 = vmatpush.msrb.mxu2 %v1264_v50 }
0x1e46   :  { %v1065_v57 = vadd.f32 %v1063_v56, %v1720_v7  ;;  %v1263_v56 = vld [vmem:[%s1824_s4 + $0x10] sm:$0xff] }
0x1e47   :  { %1288 = vmatpush.msrb.mxu2 %v1263_v56 }
0x1e48   :  { %1459 = vtanh.f32 %v1065_v57  ;;  %v1336_v62 = vmul.f32 -1.442695, %v1065_v57  ;;  %v1262_v57 = vld [vmem:[%s1824_s4 + $0x8] sm:$0xff] }
0x1e49   :  { %1289 = vmatpush.msrb.mxu2 %v1262_v57 }
0x1e4a   :  { %1461 = vpow2.f32 %v1336_v62 }
0x1e4e   :  { %v1460_v58 = vpop.eup %1459 }
0x1e4f   :  { %1091 = vrot.lane.b32.xlu1 %v1460_v58, %s1483_s2  ;;  %v1261_v58 = vld [vmem:[%s1824_s4] sm:$0xff] }
0x1e50   :  { %v1462_v2 = vpop.eup %1461  ;;  %1290 = vmatpush.msrb.mxu2 %v1261_v58 }
0x1e51   :  { %v1069_v3 = vadd.f32 1.0, %v1462_v2 }
0x1e53   :  { %1463 = vrcp.f32 %v1069_v3  ;;  %v1081_v1 = vand.u32 2147483648, %v1069_v3  ;;  %vm1075_vm8 = vweird.f32 %v1069_v3  ;;  %v1079_v6 = vand.u32 2147483647, %v1069_v3 }
0x1e55   :  { %v1082_v9 = vor.u32 1.1754944e-38, %v1081_v1  ;;  %vm1080_vm10 = vcmp.eq.f32.partialorder %v1079_v6, 8.507059e+37 }
0x1e59   :  { %v1464_v63 = vpop.eup %1463 }
0x1e5a   :  { %v1071_v61 = vmul.f32 %v1464_v63, %v1069_v3  ;;  %vm1076_vm3 = vweird.f32 %v1464_v63 }
0x1e5b   :  { %vm1077_vm9 = vmor %vm1075_vm8, %vm1076_vm3 }
0x1e5c   :  { %v1072_v4 = vsub.f32 1.0, %v1071_v61 }
0x1e5e   :  { %v1073_v5 = vmul.f32 %v1464_v63, %v1072_v4 }
0x1e60   :  { %v1074_v0 = vadd.f32 %v1464_v63, %v1073_v5 }
0x1e62   :  { %v1078_v8 = vsel %vm1077_vm9, %v1464_v63, %v1074_v0 }
0x1e63   :  { %v1083_v10 = vsel %vm1080_vm10, %v1082_v9, %v1078_v8 }
0x1e64   :  { %v1089_v26 = vmul.f32 %v1087_v11, %v1083_v10 }
0x1ec1   :  { %v1092_v59 = vpop.permute.xlu1 %1091 }
0x1ec2   :  { %v1094_v60 = vmul.f32 %v1092_v59, %v1720_v7 }
0x1ec4   :  { %1096 = vrot.lane.b32.xlu2 %v1094_v60, %s1483_s2 }
0x1f1e   :  { %v1097_v12 = vpop.permute.xlu2 %1096 }
0x1f1f   :  { %v1099_v13 = vadd.f32 %v1097_v12, %v1089_v26 }
0x1f21   :  { %1465 = vtanh.f32 %v1099_v13  ;;  %v1157_v42 = vrot.slane %v1099_v13, 7 }
0x1f27   :  { %v1466_v14 = vpop.eup %1465 }
0x1f28   :  { %1102 = vrot.lane.b32.xlu0 %v1466_v14, %s1483_s2 }
0x1f9a   :  { %v1103_v15 = vpop.permute.xlu0 %1102 }
0x1f9b   :  { %v1105_v16 = vmul.f32 %v1103_v15, %v1083_v10  ;;  %v1346_v15 = vld [vmem:[%s1825_s5] ss:$0 sm:$0xff] }
0x1f9d   :  { %v1107_v18 = vrot.slane %v1105_v16, 5  ;;  %v1250_v19 = vsel %vm677_vm11, %v1249_v54, %v1105_v16 }
0x1f9f   :  { %1108 = vrot.lane.b32.xlu1 %v1107_v18, %s1484_s20 }
0x2011   :  { %v1109_v20 = vpop.permute.xlu1 %1108 }
0x2012   :  { %1337 = vmatmul.msk.f32.vlgmr.msrb.gmra.mxu0 %vm118_vm1, %v1109_v20 }
0x208f   :  { %v1129_v22 = vpop.f32.mrf.mxu0 }
0x2090   :  { %v1133_v23 = vrot.slane %v1129_v22, 2 }
0x2092   :  { %v1135_v24 = vadd.f32 %v1133_v23, %v1720_v7 }
0x2094   :  { %1467 = vtanh.f32 %v1135_v24  ;;  %v1338_v30 = vmul.f32 -1.442695, %v1135_v24 }
0x2096   :  { %1469 = vpow2.f32 %v1338_v30 }
0x209a   :  { %v1468_v25 = vpop.eup %1467 }
0x209b   :  { %1161 = vrot.lane.b32.xlu2 %v1468_v25, %s1483_s2 }
0x209c   :  { %v1470_v31 = vpop.eup %1469 }
0x209d   :  { %v1139_v32 = vadd.f32 1.0, %v1470_v31 }
0x209f   :  { %1471 = vrcp.f32 %v1139_v32  ;;  %v1151_v38 = vand.u32 2147483648, %v1139_v32  ;;  %vm1145_vm6 = vweird.f32 %v1139_v32  ;;  %v1149_v27 = vand.u32 2147483647, %v1139_v32 }
0x20a1   :  { %v1152_v40 = vor.u32 1.1754944e-38, %v1151_v38  ;;  %vm1150_vm13 = vcmp.eq.f32.partialorder %v1149_v27, 8.507059e+37 }
0x20a5   :  { %v1472_v33 = vpop.eup %1471 }
0x20a6   :  { %v1141_v34 = vmul.f32 %v1472_v33, %v1139_v32  ;;  %vm1146_vm11 = vweird.f32 %v1472_v33 }
0x20a7   :  { %vm1147_vm7 = vmor %vm1145_vm6, %vm1146_vm11 }
0x20a8   :  { %v1142_v35 = vsub.f32 1.0, %v1141_v34 }
0x20aa   :  { %v1143_v36 = vmul.f32 %v1472_v33, %v1142_v35 }
0x20ac   :  { %v1144_v37 = vadd.f32 %v1472_v33, %v1143_v36 }
0x20ae   :  { %v1148_v39 = vsel %vm1147_vm7, %v1472_v33, %v1144_v37 }
0x20af   :  { %v1153_v41 = vsel %vm1150_vm13, %v1152_v40, %v1148_v39 }
0x20b0   :  { %v1159_v43 = vmul.f32 %v1157_v42, %v1153_v41 }
0x20f5   :  { %v1162_v28 = vpop.permute.xlu2 %1161 }
0x20f6   :  { %v1164_v29 = vmul.f32 %v1162_v28, %v1720_v7 }
0x20f8   :  { %1166 = vrot.lane.b32.xlu0 %v1164_v29, %s1483_s2 }
0x216a   :  { %v1167_v44 = vpop.permute.xlu0 %1166 }
0x216b   :  { %v1169_v45 = vadd.f32 %v1167_v44, %v1159_v43 }
0x216d   :  { %1473 = vtanh.f32 %v1169_v45  ;;  %v1227_v11 = vrot.slane %v1169_v45, 7 }
0x2173   :  { %v1474_v17 = vpop.eup %1473 }
0x2174   :  { %1172 = vrot.lane.b32.xlu1 %v1474_v17, %s1483_s2 }
0x21e6   :  { %v1173_v46 = vpop.permute.xlu1 %1172 }
0x21e7   :  { %v1175_v47 = vmul.f32 %v1173_v46, %v1153_v41 }
0x21e9   :  { %v1177_v48 = vrot.slane %v1175_v47, 6  ;;  %v1779_v49 = vsel %vm679_vm2, %v1250_v19, %v1175_v47 }
0x21eb   :  { %1178 = vrot.lane.b32.xlu2 %v1177_v48, %s1484_s20 }
0x2245   :  { %v1179_v51 = vpop.permute.xlu2 %1178 }
0x2246   :  { %1339 = vmatmul.msk.f32.vlgmr.msra.gmra.mxu1 %vm118_vm1, %v1179_v51 }
0x22c3   :  { %v1199_v52 = vpop.f32.mrf.mxu1 }
0x22c4   :  { %v1203_v53 = vrot.slane %v1199_v52, 1 }
0x22c6   :  { %v1205_v54 = vadd.f32 %v1203_v53, %v1720_v7 }
0x22c8   :  { %1475 = vtanh.f32 %v1205_v54  ;;  %v1340_v2 = vmul.f32 -1.442695, %v1205_v54 }
0x22ca   :  { %1477 = vpow2.f32 %v1340_v2 }
0x22ce   :  { %v1476_v55 = vpop.eup %1475 }
0x22cf   :  { %1231 = vrot.lane.b32.xlu0 %v1476_v55, %s1483_s2 }
0x22d0   :  { %v1478_v3 = vpop.eup %1477 }
0x22d1   :  { %v1209_v63 = vadd.f32 1.0, %v1478_v3 }
0x22d3   :  { %1479 = vrcp.f32 %v1209_v63  ;;  %vm1215_vm14 = vweird.f32 %v1209_v63  ;;  %v1219_v6 = vand.u32 2147483647, %v1209_v63 }
0x22d5   :  { %vm1220_vm15 = vcmp.eq.f32.partialorder %v1219_v6, 8.507059e+37 }
0x22d7   :  { %684 = vrot.lane.b32.xlu0 %v1712_v21, %s1484_s20 }
0x22d9   :  { %v1480_v61 = vpop.eup %1479 }
0x22da   :  { %v1211_v4 = vmul.f32 %v1480_v61, %v1209_v63  ;;  %vm1216_vm2 = vweird.f32 %v1480_v61 }
0x22db   :  { %vm1217_vm12 = vmor %vm1215_vm14, %vm1216_vm2 }
0x22dc   :  { %v1212_v5 = vsub.f32 1.0, %v1211_v4 }
0x22de   :  { %v1213_v0 = vmul.f32 %v1480_v61, %v1212_v5 }
0x22e0   :  { %v1214_v1 = vadd.f32 %v1480_v61, %v1213_v0 }
0x22e2   :  { %v1218_v8 = vsel %vm1217_vm12, %v1480_v61, %v1214_v1 }
0x2341   :  { %v1232_v21 = vpop.permute.xlu0 %1231 }
0x2342   :  { %v1234_v59 = vmul.f32 %v1232_v21, %v1720_v7  ;;  %v1221_v7 = vand.u32 2147483648, %v1209_v63 }
0x2344   :  { %1236 = vrot.lane.b32.xlu1 %v1234_v59, %s1483_s2  ;;  %v1222_v9 = vor.u32 1.1754944e-38, %v1221_v7 }
0x2346   :  { %v1223_v10 = vsel %vm1220_vm15, %v1222_v9, %v1218_v8 }
0x2347   :  { %v1229_v26 = vmul.f32 %v1227_v11, %v1223_v10 }
0x2349   :  { %v685_v60 = vpop.permute.xlu0 %684 }
0x234a   :  { %687 = vst.msk [vmem:[#allocation3] sm:$0xff] %vm118_vm1, %v685_v60 }
0x2351   :  { %v1259_v62 = vld [vmem:[#allocation3] sm:$0xff] }
0x2352   :  { %1341 = vmatmul.msk.f32.vlgmr.msrb.gmra.mxu2 %vm118_vm1, %v1259_v62 }
0x23b6   :  { %v1237_v12 = vpop.permute.xlu1 %1236 }
0x23b7   :  { %v1239_v13 = vadd.f32 %v1237_v12, %v1229_v26 }
0x23b9   :  { %1481 = vtanh.f32 %v1239_v13 }
0x23bf   :  { %v1482_v14 = vpop.eup %1481 }
0x23c0   :  { %1242 = vrot.lane.b32.xlu2 %v1482_v14, %s1483_s2 }
0x23d5   :  { %v1292_v16 = vpop.f32.mrf.mxu2 }
0x23d6   :  { %v1293_v18 = vadd.f32 %v1346_v15, %v1292_v16 }
0x23d8   :  { %1299 = vst.msk [vmem:[%s1826_s8] sm:$0xff] %vm1298_vm5, %v1293_v18 }
0x241a   :  { %v1243_v19 = vpop.permute.xlu2 %1242 }
0x241b   :  { %v1245_v20 = vmul.f32 %v1243_v19, %v1223_v10 }
0x241d   :  { %v1252_v22 = vsel %vm681_vm0, %v1779_v49, %v1245_v20 }
0x241e   :  { %1254 = vrot.lane.b32.xlu1 %v1252_v22, %s1484_s20 }
0x2490   :  { %v1255_v23 = vpop.permute.xlu1 %1254 }
0x2491   :  { %1258 = vst.msk [vmem:[#allocation3 + $0x8] sm:$0xff] %vm118_vm1, %v1255_v23 }
0x2498   :  { %v1260_v24 = vld [vmem:[#allocation3 + $0x8] sm:$0xff] }
0x2499   :  { %1342 = vmatmul.msk.f32.gmra.mxu2 %vm118_vm1, %v1260_v24 }
0x251c   :  { %v1295_v25 = vpop.f32.mrf.mxu2 }
0x251d   :  { %v1296_v28 = vadd.f32 %v1346_v15, %v1295_v25 }
0x251f   :  { %1300 = vst.msk [vmem:[%s1826_s8 + $0x8] sm:$0xff] %vm1298_vm5, %v1296_v28 }

</bundles_post_ra>
